<compile_context>
chip_gen: v5e
topology: v5e:2x2
jax: 0.10.0
libtpu: 0.0.40
codegen_flags: <defaults>
</compile_context>

<pallas_src>
import jax
import jax.numpy as jnp
from jax.experimental import pallas as pl
from jax.experimental.pallas import tpu as pltpu

MID_DIM = 512          # hard-coded hidden width in the PyTorch module
BN_EPS = 1e-5
LEAKY_SLOPE = 0.01
LANE = 128
VMEM_LIMIT = 48 * 1024 * 1024


def _round_up(x, m):
    return ((x + m - 1) // m) * m


def _pick_th(h, w, target_rows=1024):
    """Largest divisor of H whose row band has <= ~target_rows output pixels."""
    best = 1
    for cand in range(1, h + 1):
        if h % cand == 0 and cand * w <= max(target_rows, w):
            best = cand
    return best


# ------------------------- layer 1: im2col matmul + BN partial stats ---------
def _first_conv_kernel(p_ref, w_ref, b_ref, out_ref, stats_ref):
    t = pl.program_id(1)
    acc = jnp.dot(p_ref[0], w_ref[...], preferred_element_type=jnp.float32)
    acc = acc + b_ref[...]                                  # (rows, C1) + (1, C1)
    out_ref[...] = acc.reshape(out_ref.shape).astype(out_ref.dtype)

    @pl.when(t == 0)
    def _():
        stats_ref[...] = jnp.zeros_like(stats_ref)

    stats_ref[0, 0:1, :] += jnp.sum(acc, axis=0, keepdims=True)
    stats_ref[0, 1:2, :] += jnp.sum(acc * acc, axis=0, keepdims=True)


def _first_conv_pass(patches, w2d, bias_row, tr, nh):
    n, hw, k9p = patches.shape
    cout = w2d.shape[1]
    return pl.pallas_call(
        _first_conv_kernel,
        out_shape=(
            jax.ShapeDtypeStruct((n, hw, cout), jnp.bfloat16),   # raw conv out
            jax.ShapeDtypeStruct((n, 2, cout), jnp.float32),     # per-image sum / sumsq
        ),
        grid_spec=pltpu.PrefetchScalarGridSpec(
            num_scalar_prefetch=0,
            grid=(n, nh),
            in_specs=[
                pl.BlockSpec((1, tr, k9p), lambda i, j: (i, j, 0)),
                pl.BlockSpec((k9p, cout), lambda i, j: (0, 0)),
                pl.BlockSpec((1, cout), lambda i, j: (0, 0)),
            ],
            out_specs=[
                pl.BlockSpec((1, tr, cout), lambda i, j: (i, j, 0)),
                pl.BlockSpec((1, 2, cout), lambda i, j: (i, 0, 0)),
            ],
        ),
        compiler_params=pltpu.CompilerParams(
            dimension_semantics=("parallel", "arbitrary"),
            vmem_limit_bytes=VMEM_LIMIT,
        ),
    )(patches, w2d, bias_row)


# ------- layers 2/3: fused [BN+LReLU of prev layer] -> conv3x3 -> stats ------
def _conv_fused_kernel(x_hbm, scale_ref, shift_ref, w_ref, b_ref,
                       out_ref, stats_ref, slab, aext, sem):
    n = pl.program_id(0)
    t = pl.program_id(1)
    nh = pl.num_programs(1)
    th = out_ref.shape[1]
    wd = out_ref.shape[2]
    cin = slab.shape[3]
    cout = out_ref.shape[3]
    h_tot = x_hbm.shape[1]
    rows = th * wd

    # ---- manual, double-buffered halo DMA (3 row-clamped copies per band) ---
    def start_fetch(t_idx, slot):
        base = t_idx * th
        top = jnp.maximum(base - 1, 0)               # clamped; zeroed later if t==0
        bot = jnp.minimum(base + th, h_tot - 1)      # clamped; zeroed later if last
        pltpu.make_async_copy(x_hbm.at[n, pl.ds(top, 1)],
                              slab.at[slot, pl.ds(0, 1)], sem.at[slot, 0]).start()
        pltpu.make_async_copy(x_hbm.at[n, pl.ds(base, th)],
                              slab.at[slot, pl.ds(1, th)], sem.at[slot, 1]).start()
        pltpu.make_async_copy(x_hbm.at[n, pl.ds(bot, 1)],
                              slab.at[slot, pl.ds(th + 1, 1)], sem.at[slot, 2]).start()

    def wait_fetch(slot):
        pltpu.make_async_copy(x_hbm.at[n, pl.ds(0, 1)],
                              slab.at[slot, pl.ds(0, 1)], sem.at[slot, 0]).wait()
        pltpu.make_async_copy(x_hbm.at[n, pl.ds(0, th)],
                              slab.at[slot, pl.ds(1, th)], sem.at[slot, 1]).wait()
        pltpu.make_async_copy(x_hbm.at[n, pl.ds(0, 1)],
                              slab.at[slot, pl.ds(th + 1, 1)], sem.at[slot, 2]).wait()

    slot = jax.lax.rem(t, 2)

    @pl.when(t == 0)
    def _():
        start_fetch(0, 0)                            # prime slot 0 (per image)

    @pl.when(t + 1 < nh)
    def _():
        start_fetch(t + 1, jax.lax.rem(t + 1, 2))    # prefetch next band

    wait_fetch(slot)

    # ---- apply previous layer's BatchNorm + LeakyReLU to the slab (f32) -----
    scale_b = scale_ref[...].reshape(1, 1, cin)
    shift_b = shift_ref[...].reshape(1, 1, cin)
    raw = slab[slot].astype(jnp.float32)             # (th+2, W, Cin)
    act = raw * scale_b + shift_b
    act = jnp.where(act >= 0, act, LEAKY_SLOPE * act)
    act_bf = act.astype(jnp.bfloat16)

    # ---- build the zero-padded activation window in VMEM --------------------
    aext[:, 1:wd + 1, :] = act_bf
    zcol = jnp.zeros((th + 2, 1, cin), jnp.bfloat16)
    aext[:, 0:1, :] = zcol
    aext[:, wd + 1:wd + 2, :] = zcol

    @pl.when(t == 0)
    def _():
        aext[0:1, :, :] = jnp.zeros((1, wd + 2, cin), jnp.bfloat16)

    @pl.when(t == nh - 1)
    def _():
        aext[th + 1:th + 2, :, :] = jnp.zeros((1, wd + 2, cin), jnp.bfloat16)

    # ---- 9 accumulated K=Cin MXU matmuls (no im2col patch) ------------------
    acc = jnp.zeros((rows, cout), jnp.float32)
    for ky in range(3):
        for kx in range(3):
            tap = aext[ky:ky + th, kx:kx + wd, :].reshape(rows, cin)
            acc = acc + jnp.dot(tap, w_ref[ky * 3 + kx],
                                preferred_element_type=jnp.float32)
    acc = acc + b_ref[...]                           # (rows, Cout) + (1, Cout)

    out_ref[...] = acc.reshape(1, th, wd, cout).astype(out_ref.dtype)

    # ---- BN partial sums, accumulated in the resident stats block -----------
    @pl.when(t == 0)
    def _():
        stats_ref[...] = jnp.zeros_like(stats_ref)

    stats_ref[0, 0:1, :] += jnp.sum(acc, axis=0, keepdims=True)
    stats_ref[0, 1:2, :] += jnp.sum(acc * acc, axis=0, keepdims=True)


def _fused_conv_pass(prev_raw, scale_row, shift_row, w9, bias_row, th, nh):
    n, h, w, cin = prev_raw.shape
    cout = w9.shape[2]
    return pl.pallas_call(
        _conv_fused_kernel,
        out_shape=(
            jax.ShapeDtypeStruct((n, h, w, cout), jnp.bfloat16),
            jax.ShapeDtypeStruct((n, 2, cout), jnp.float32),
        ),
        grid_spec=pltpu.PrefetchScalarGridSpec(
            num_scalar_prefetch=0,
            grid=(n, nh),
            in_specs=[
                pl.BlockSpec(memory_space=pl.ANY),                     # prev raw conv (HBM)
                pl.BlockSpec((1, cin), lambda i, j: (0, 0)),           # BN scale (prev layer)
                pl.BlockSpec((1, cin), lambda i, j: (0, 0)),           # BN shift (prev layer)
                pl.BlockSpec((9, cin, cout), lambda i, j: (0, 0, 0)),  # weights per tap
                pl.BlockSpec((1, cout), lambda i, j: (0, 0)),          # conv bias
            ],
            out_specs=[
                pl.BlockSpec((1, th, w, cout), lambda i, j: (i, j, 0, 0)),
                pl.BlockSpec((1, 2, cout), lambda i, j: (i, 0, 0)),
            ],
            scratch_shapes=[
                pltpu.VMEM((2, th + 2, w, cin), jnp.bfloat16),         # double-buffered rows
                pltpu.VMEM((th + 2, w + 2, cin), jnp.bfloat16),        # zero-padded activation
                pltpu.SemaphoreType.DMA((2, 3)),
            ],
        ),
        compiler_params=pltpu.CompilerParams(
            dimension_semantics=("parallel", "arbitrary"),
            vmem_limit_bytes=VMEM_LIMIT,
        ),
    )(prev_raw, scale_row, shift_row, w9, bias_row)


# ------------------------- final BN + LeakyReLU (last layer only) ------------
def _bn_lrelu_kernel(y_ref, scale_ref, shift_ref, o_ref):
    c = o_ref.shape[-1]
    y = y_ref[...].astype(jnp.float32)
    z = y * scale_ref[...].reshape(1, 1, 1, c) + shift_ref[...].reshape(1, 1, 1, c)
    o_ref[...] = jnp.where(z >= 0, z, LEAKY_SLOPE * z)


def _bn_lrelu_pass(conv_raw, scale_row, shift_row, th, nh):
    n, h, w, c = conv_raw.shape
    return pl.pallas_call(
        _bn_lrelu_kernel,
        out_shape=jax.ShapeDtypeStruct((n, h, w, c), jnp.float32),
        grid_spec=pltpu.PrefetchScalarGridSpec(
            num_scalar_prefetch=0,
            grid=(n, nh),
            in_specs=[
                pl.BlockSpec((1, th, w, c), lambda i, j: (i, j, 0, 0)),
                pl.BlockSpec((1, c), lambda i, j: (0, 0)),
                pl.BlockSpec((1, c), lambda i, j: (0, 0)),
            ],
            out_specs=pl.BlockSpec((1, th, w, c), lambda i, j: (i, j, 0, 0)),
        ),
        compiler_params=pltpu.CompilerParams(
            dimension_semantics=("parallel", "parallel"),
            vmem_limit_bytes=VMEM_LIMIT,
        ),
    )(conv_raw, scale_row, shift_row)


# ------------------------- helpers -------------------------------------------
def _im2col_host(x, k9p):
    """Host-side im2col for the cheap narrow first layer (lane-dense K)."""
    n, h, w, c = x.shape
    xp = jnp.pad(x, ((0, 0), (1, 1), (1, 1), (0, 0)))
    taps = [xp[:, ky:ky + h, kx:kx + w, :] for ky in range(3) for kx in range(3)]
    p = jnp.concatenate(taps, axis=-1).reshape(n, h * w, 9 * c)
    if k9p > 9 * c:
        p = jnp.pad(p, ((0, 0), (0, 0), (0, k9p - 9 * c)))
    return p.astype(jnp.bfloat16)


def _bn_scale_shift(stats, gamma, beta, count):
    tot = jnp.sum(stats, axis=0)                             # (2, C)
    mean = tot[0] / count
    var = jnp.maximum(tot[1] / count - mean * mean, 0.0)     # biased variance
    scale = gamma * jax.lax.rsqrt(var + BN_EPS)
    shift = beta - mean * scale
    return scale.reshape(1, -1), shift.reshape(1, -1)


# ------------------------- module wrapper -------------------------------------
class BackboneOutBlockPallas:
    """JAX/Pallas port of models/backbone.py::BackboneOutBlock (train-mode BN)."""

    def __init__(self, in_dim, out_dim, key):
        self.in_dim = in_dim
        self.out_dim = out_dim
        self.layers = []
        if in_dim == out_dim:
            return
        assert MID_DIM % LANE == 0
        co_pad = _round_up(out_dim, LANE)
        # (cin_true, cin_eff, cout_true, cout_eff); channel dims lane-padded,
        # except the real network input which keeps its true channel count.
        specs = [
            (in_dim, in_dim, MID_DIM, MID_DIM),
            (MID_DIM, MID_DIM, out_dim, co_pad),
            (out_dim, co_pad, out_dim, co_pad),
        ]
        for li, (ci, ci_e, co, co_e) in enumerate(specs):
            key, kw, kb = jax.random.split(key, 3)
            fan_in = ci * 9
            bound = 1.0 / (fan_in ** 0.5)        # PyTorch Conv2d default init range
            w = jax.random.uniform(kw, (3, 3, ci, co), jnp.float32, -bound, bound)
            b = jax.random.uniform(kb, (co,), jnp.float32, -bound, bound)
            # Zero-pad channels; padded gamma=0 keeps padded channels exactly 0.
            w4 = jnp.zeros((3, 3, ci_e, co_e), jnp.float32).at[:, :, :ci, :co].set(w)
            b_p = jnp.zeros((co_e,), jnp.float32).at[:co].set(b)
            gamma = jnp.zeros((co_e,), jnp.float32).at[:co].set(1.0)
            beta = jnp.zeros((co_e,), jnp.float32)
            layer = dict(w4=w4, b=b_p, b_row=b_p.reshape(1, -1),
                         gamma=gamma, beta=beta)
            if li == 0:
                k9p = _round_up(9 * ci_e, LANE)
                layer["k9p"] = k9p
                layer["w2d"] = (jnp.zeros((k9p, co_e), jnp.float32)
                                .at[:9 * ci_e, :].set(w4.reshape(9 * ci_e, co_e))
                                .astype(jnp.bfloat16))
            else:
                layer["w9"] = w4.reshape(9, ci_e, co_e).astype(jnp.bfloat16)
            self.layers.append(layer)

    def __call__(self, x_nchw):
        if self.in_dim == self.out_dim:
            return x_nchw
        x = jnp.transpose(x_nchw, (0, 2, 3, 1)).astype(jnp.float32)   # NCHW -> NHWC
        n, h, w, _ = x.shape
        th = _pick_th(h, w)
        assert h % th == 0
        nh = h // th
        tr = th * w
        cnt = float(n * h * w)

        l1, l2, l3 = self.layers

        # layer 1: host im2col (narrow input) + one tiled MXU matmul
        patches = _im2col_host(x, l1["k9p"])
        y1, s1 = _first_conv_pass(patches, l1["w2d"], l1["b_row"], tr, nh)
        sc1, sh1 = _bn_scale_shift(s1, l1["gamma"], l1["beta"], cnt)
        y1 = y1.reshape(n, h, w, MID_DIM)

        # layer 2: BN1+LReLU1 fused into the conv pass
        y2, s2 = _fused_conv_pass(y1, sc1, sh1, l2["w9"], l2["b_row"], th, nh)
        sc2, sh2 = _bn_scale_shift(s2, l2["gamma"], l2["beta"], cnt)

        # layer 3: BN2+LReLU2 fused into the conv pass
        y3, s3 = _fused_conv_pass(y2, sc2, sh2, l3["w9"], l3["b_row"], th, nh)
        sc3, sh3 = _bn_scale_shift(s3, l3["gamma"], l3["beta"], cnt)

        # final BN3 + LReLU3 (standalone elementwise pass)
        out = _bn_lrelu_pass(y3, sc3, sh3, th, nh)
        return jnp.transpose(out[..., : self.out_dim], (0, 3, 1, 2))  # NHWC -> NCHW


# ------------------------- pure-JAX reference ---------------------------------
def _ref_layer(a, w4, b, gamma, beta):
    # Mirrors kernel precision: bf16 MXU operands, f32 accumulation & BN math,
    # bf16 storage of the raw conv output between layers.
    y = jax.lax.conv_general_dilated(
        a.astype(jnp.bfloat16), w4.astype(jnp.bfloat16),
        window_strides=(1, 1), padding=((1, 1), (1, 1)),
        dimension_numbers=("NHWC", "HWIO", "NHWC"),
        preferred_element_type=jnp.float32)
    y = y + b.reshape(1, 1, 1, -1)
    mean = jnp.mean(y, axis=(0, 1, 2))
    var = jnp.mean(jnp.square(y - mean), axis=(0, 1, 2))
    scale = gamma * jax.lax.rsqrt(var + BN_EPS)
    shift = beta - mean * scale
    y_q = y.astype(jnp.bfloat16).astype(jnp.float32)          # bf16 inter-layer storage
    z = y_q * scale + shift
    return jnp.where(z >= 0, z, LEAKY_SLOPE * z)


def reference_forward(block, x_nchw):
    if block.in_dim == block.out_dim:
        return x_nchw
    a = jnp.transpose(x_nchw, (0, 2, 3, 1)).astype(jnp.float32)
    for lyr in block.layers:
        a = _ref_layer(a, lyr["w4"], lyr["b"], lyr["gamma"], lyr["beta"])
    return jnp.transpose(a[..., : block.out_dim], (0, 3, 1, 2))


if __name__ == "__main__":
    key = jax.random.PRNGKey(0)
    k_x, k_p = jax.random.split(key)

    N, in_dim, H, W = 2, 4, 16, 16
    out_dim = 8
    x = jax.random.normal(k_x, (N, in_dim, H, W), jnp.float32)

    block = BackboneOutBlockPallas(in_dim, out_dim, k_p)
    y = jax.block_until_ready(block(x))
    assert y.shape == (N, out_dim, H, W), y.shape

    y_ref = jax.block_until_ready(reference_forward(block, x))
    max_err = float(jnp.max(jnp.abs(y - y_ref)))
    assert jnp.allclose(y, y_ref, atol=2e-2, rtol=2e-2), f"max_err={max_err}"

    # identity path (in_dim == out_dim) returns input unchanged
    ident = BackboneOutBlockPallas(in_dim, in_dim, k_p)
    y_id = jax.block_until_ready(ident(x))
    assert jnp.array_equal(y_id, x)

    print("KERNEL_OK")
</pallas_src>

<mosaic_0001>
module attributes {stable_mosaic.version = 11 : i64} {
  func.func @_first_conv_kernel(%arg0: i32, %arg1: i32, %arg2: memref<1x256x128xbf16, #tpu.memory_space<vmem>>, %arg3: memref<128x512xbf16, #tpu.memory_space<vmem>>, %arg4: memref<1x512xf32, #tpu.memory_space<vmem>>, %arg5: memref<1x256x512xbf16, #tpu.memory_space<vmem>>, %arg6: memref<1x2x512xf32, #tpu.memory_space<vmem>>) attributes {dimension_semantics = [#tpu.dimension_semantics<parallel>, #tpu.dimension_semantics<arbitrary>], iteration_bounds = array<i64: 2, 1>, scalar_prefetch = 0 : i64, scratch_operands = 0 : i64, tpu.core_type = #tpu.core_type<tc>, window_params = [{transform_indices = @transform_0, window_bounds = array<i64: 1, 256, 128>}, {pipeline_mode = #tpu.pipeline_mode<synchronous>, transform_indices = @transform_1, window_bounds = array<i64: 128, 512>}, {pipeline_mode = #tpu.pipeline_mode<synchronous>, transform_indices = @transform_2, window_bounds = array<i64: 1, 512>}, {transform_indices = @transform_3, window_bounds = array<i64: 1, 256, 512>}, {transform_indices = @transform_4, window_bounds = array<i64: 1, 2, 512>}]} {
    %c0 = arith.constant 0 : index
    %c0_0 = arith.constant 0 : index
    %c0_1 = arith.constant 0 : index
    %0 = vector.load %arg2[%c0, %c0_0, %c0_1] : memref<1x256x128xbf16, #tpu.memory_space<vmem>>, vector<1x256x128xbf16>
    %1 = vector.shape_cast %0 : vector<1x256x128xbf16> to vector<256x128xbf16>
    %c0_2 = arith.constant 0 : index
    %c0_3 = arith.constant 0 : index
    %2 = vector.load %arg3[%c0_2, %c0_3] : memref<128x512xbf16, #tpu.memory_space<vmem>>, vector<128x512xbf16>
    %cst = arith.constant dense<0.000000e+00> : vector<256x512xf32>
    %3 = tpu.matmul %1, %2, %cst {dimension_numbers = #tpu.dot_dimension_numbers<[1], [0], [0], [1], [0, 0, 1, 1], [], []>} : vector<256x128xbf16>, vector<128x512xbf16>, vector<256x512xf32> -> vector<256x512xf32>
    %c0_4 = arith.constant 0 : index
    %c0_5 = arith.constant 0 : index
    %4 = vector.load %arg4[%c0_4, %c0_5] : memref<1x512xf32, #tpu.memory_space<vmem>>, vector<1x512xf32>
    %5 = vector.broadcast %4 : vector<1x512xf32> to vector<256x512xf32>
    %6 = arith.addf %3, %5 : vector<256x512xf32>
    %7 = vector.shape_cast %6 : vector<256x512xf32> to vector<1x256x512xf32>
    %8 = arith.truncf %7 : vector<1x256x512xf32> to vector<1x256x512xbf16>
    %c0_6 = arith.constant 0 : index
    %c0_7 = arith.constant 0 : index
    %c0_8 = arith.constant 0 : index
    %9 = vector.load %arg5[%c0_6, %c0_7, %c0_8] : memref<1x256x512xbf16, #tpu.memory_space<vmem>>, vector<1x256x512xbf16>
    tpu.vector_store %arg5[%c0_6, %c0_7, %c0_8], %8 {strides = array<i32>} : memref<1x256x512xbf16, #tpu.memory_space<vmem>>, vector<1x256x512xbf16>,
    %c0_i32 = arith.constant 0 : i32
    %10 = arith.cmpi eq, %arg1, %c0_i32 : i32
    %11 = arith.extui %10 : i1 to i32
    %c0_i32_9 = arith.constant 0 : i32
    %12 = arith.cmpi ne, %11, %c0_i32_9 : i32
    scf.if %12 {
      %cst_23 = arith.constant 0.000000e+00 : f32
      %30 = vector.broadcast %cst_23 : f32 to vector<1x2x512xf32>
      %c0_24 = arith.constant 0 : index
      %c0_25 = arith.constant 0 : index
      %c0_26 = arith.constant 0 : index
      %31 = vector.load %arg6[%c0_24, %c0_25, %c0_26] : memref<1x2x512xf32, #tpu.memory_space<vmem>>, vector<1x2x512xf32>
      tpu.vector_store %arg6[%c0_24, %c0_25, %c0_26], %30 {strides = array<i32>} : memref<1x2x512xf32, #tpu.memory_space<vmem>>, vector<1x2x512xf32>,
    } else {
    }
    %c0_10 = arith.constant 0 : index
    %c0_11 = arith.constant 0 : index
    %c0_12 = arith.constant 0 : index
    %13 = vector.load %arg6[%c0_10, %c0_11, %c0_12] : memref<1x2x512xf32, #tpu.memory_space<vmem>>, vector<1x1x512xf32>
    %14 = vector.shape_cast %13 : vector<1x1x512xf32> to vector<1x512xf32>
    %cst_13 = arith.constant dense<0.000000e+00> : vector<512xf32>
    %15 = vector.multi_reduction <add>, %6, %cst_13 [0] : vector<256x512xf32> to vector<512xf32>
    %16 = vector.shape_cast %15 : vector<512xf32> to vector<1x512xf32>
    %17 = arith.addf %14, %16 : vector<1x512xf32>
    %c0_14 = arith.constant 0 : index
    %c0_15 = arith.constant 0 : index
    %c0_16 = arith.constant 0 : index
    %18 = vector.load %arg6[%c0_14, %c0_15, %c0_16] : memref<1x2x512xf32, #tpu.memory_space<vmem>>, vector<1x1x512xf32>
    %19 = vector.shape_cast %18 : vector<1x1x512xf32> to vector<1x512xf32>
    %20 = vector.shape_cast %17 : vector<1x512xf32> to vector<1x1x512xf32>
    tpu.vector_store %arg6[%c0_14, %c0_15, %c0_16], %20 {strides = array<i32>} : memref<1x2x512xf32, #tpu.memory_space<vmem>>, vector<1x1x512xf32>,
    %c0_17 = arith.constant 0 : index
    %c1 = arith.constant 1 : index
    %c0_18 = arith.constant 0 : index
    %21 = vector.load %arg6[%c0_17, %c1, %c0_18] : memref<1x2x512xf32, #tpu.memory_space<vmem>>, vector<1x1x512xf32>
    %22 = vector.shape_cast %21 : vector<1x1x512xf32> to vector<1x512xf32>
    %23 = arith.mulf %6, %6 : vector<256x512xf32>
    %cst_19 = arith.constant dense<0.000000e+00> : vector<512xf32>
    %24 = vector.multi_reduction <add>, %23, %cst_19 [0] : vector<256x512xf32> to vector<512xf32>
    %25 = vector.shape_cast %24 : vector<512xf32> to vector<1x512xf32>
    %26 = arith.addf %22, %25 : vector<1x512xf32>
    %c0_20 = arith.constant 0 : index
    %c1_21 = arith.constant 1 : index
    %c0_22 = arith.constant 0 : index
    %27 = vector.load %arg6[%c0_20, %c1_21, %c0_22] : memref<1x2x512xf32, #tpu.memory_space<vmem>>, vector<1x1x512xf32>
    %28 = vector.shape_cast %27 : vector<1x1x512xf32> to vector<1x512xf32>
    %29 = vector.shape_cast %26 : vector<1x512xf32> to vector<1x1x512xf32>
    tpu.vector_store %arg6[%c0_20, %c1_21, %c0_22], %29 {strides = array<i32>} : memref<1x2x512xf32, #tpu.memory_space<vmem>>, vector<1x1x512xf32>,
    return
  }
  func.func @transform_0(%arg0: i32, %arg1: i32) -> (i32, i32, i32) {
    %c0_i32 = arith.constant 0 : i32
    %c0_i32_0 = arith.constant 0 : i32
    return %arg0, %arg1, %c0_i32 : i32, i32, i32
  }
  func.func @transform_1(%arg0: i32, %arg1: i32) -> (i32, i32) {
    %c0_i32 = arith.constant 0 : i32
    %c0_i32_0 = arith.constant 0 : i32
    %c0_i32_1 = arith.constant 0 : i32
    return %c0_i32, %c0_i32_0 : i32, i32
  }
  func.func @transform_2(%arg0: i32, %arg1: i32) -> (i32, i32) {
    %c0_i32 = arith.constant 0 : i32
    %c0_i32_0 = arith.constant 0 : i32
    %c0_i32_1 = arith.constant 0 : i32
    return %c0_i32, %c0_i32_0 : i32, i32
  }
  func.func @transform_3(%arg0: i32, %arg1: i32) -> (i32, i32, i32) {
    %c0_i32 = arith.constant 0 : i32
    %c0_i32_0 = arith.constant 0 : i32
    return %arg0, %arg1, %c0_i32 : i32, i32, i32
  }
  func.func @transform_4(%arg0: i32, %arg1: i32) -> (i32, i32, i32) {
    %c0_i32 = arith.constant 0 : i32
    %c0_i32_0 = arith.constant 0 : i32
    %c0_i32_1 = arith.constant 0 : i32
    return %arg0, %c0_i32, %c0_i32_0 : i32, i32, i32
  }
}

</mosaic_0001>

<bundles_post_ra>
// kernel: tpu_custom_call.1
= control target key start
LH: loop header
LB: loop body
LE: loop exit
PB: predicated region body
PF: predicated region fallthrough
CT: control target
= control target key end

     0   :  { %s2958_s0 = inlined_call_operand.hbm [shape: bf16[2,256,128], index: 0, kind: input, shape index: {}]   ;;  %s2959_s1 = inlined_call_operand.hbm [shape: bf16[128,512], index: 1, kind: input, shape index: {}]   ;;  %s2960_s2 = inlined_call_operand.hbm [shape: f32[1,512], index: 2, kind: input, shape index: {}]   ;;  %s2961_s3 = inlined_call_operand.hbm [shape: bf16[2,256,512], index: 3, kind: output, shape index: {0}]   ;;  %s2962_s4 = inlined_call_operand.hbm [shape: f32[2,2,512], index: 4, kind: output, shape index: {1}]  }
   0x1   :  { %2963 = sst [smem:[#allocation15_spill]] %s2959_s1 }
   0x2   :  { %2964 = sst [smem:[#allocation16_spill]] %s2960_s2 }
   0x3   :  { %10 = vsyncpa [#allocation3], 0 }
   0x4   :  { %12 = vsyncpa [#allocation3 + $0x1], 0 }
   0x5   :  { %13 = vsyncpa [#allocation6], 0 }
   0x6   :  { %14 = vsyncpa [#allocation4], 0 }
   0x7   :  { %16 = vsyncpa [#allocation4 + $0x1], 0 }
   0x8   :  { %17 = vsyncpa [#allocation10], 0 }
   0x9   :  { %19 = vsyncpa [#allocation10 + $0x1], 0  ;;  %s2344_s15 = smov 0   ;;  %s2346_s16 = smov 0  }
   0xa   :  { %s2348_s17 = smov 0   ;;  %s2350_s18 = smov 0  }
   0xb   :  { %s2352_s19 = smov 0   ;;  %s2354_s20 = smov 0  }
   0xc LB: > { %s1737_s21 = sadd.s32 4294967295, %s2308_s20   ;;  %s1738_s22 = sadd.s32 4294967294, %s2308_s20   ;;  %s2308_s20 = sphi %s2354_s20, %s25_s20   ;;  %s2304_s19 = sphi %s2352_s19, %s2978_s19   ;;  %s2300_s18 = sphi %s2350_s18, %s2977_s18   ;;  %s2296_s17 = sphi %s2348_s17, %s2976_s17   ;;  %s2292_s16 = sphi %s2346_s16, %s2975_s16   ;;  %s2288_s15 = sphi %s2344_s15, %s2974_s15  }
   0xd   : > { %p59_p0 = scmp.ne.s32.totalorder %s2292_s16, %s2288_s15  ;;  %p2378_p1 = scmp.eq.s32.totalorder %s1737_s21, 0 }
   0xe   : > { %p2382_p2 = scmp.eq.s32.totalorder %s1737_s21, 1  ;;  %p133_p3 = scmp.eq.s32.totalorder %s1738_s22, 1 }
   0xf   : > { %p2388_p4 = por %p2378_p1, %p59_p0  ;;  %p1739_p5 = scmp.ge.s32.totalorder %s2308_s20, 1 }
  0x10   : > { %p2393_p6 = por %p133_p3, %p59_p0  ;;  %p166_p7 = scmp.lt.s32.totalorder %s2308_s20, 3 }
  0x11   : > { %s2969_s1 = sld [smem:[#allocation15_spill]]  ;;  %s2310_s5 = smov [#allocation5]  }
  0x12   : > { %p2401_p8 = pnand %p1739_p5, %p166_p7  ;;  %s179_s6 = sshll.u32 %s2310_s5, 4  ;;  %s180_s6 = int_to_ptr.vmem [resolvable:$true] %s179_s6 }
  0x13   : > { %p1742_p11 = scmp.ge.s32.totalorder %s2308_s20, 2  ;;  %s2971_s2 = sld [smem:[#allocation16_spill]] }
  0x14   : > { %p2019_p9 = pneg %p2401_p8  ;;  %s2311_s10 = smov 256  }
  0x15   : > { %s2312_s11 = smov 16   ;;  %s2313_s12 = smov [#allocation7]  }
  0x16   : > { %p2020_p10 = pnand %p2019_p9, %p2378_p1  ;;  %s194_s13 = sshll.u32 %s2313_s12, 4  ;;  %s195_s13 = int_to_ptr.vmem [resolvable:$true] %s194_s13 }
  0x17   : > { %s177_s29 = sshll.u32 %s2969_s1, 4  ;;  %s37_s14 = sadd.s32 1, %s2304_s19  ;;  %s178_s29 = int_to_ptr.hbm [resolvable:$true] %s177_s29 }
  0x18   : > { %2022 = dma.hbm_to_vmem [thread:$0]  (!%p2020_p10), %s178_s29, 4096, %s180_s6, [#allocation6], %s2311_s10, %s2311_s10, %s2312_s11  }
  0x19   : > { %s192_s9 = sshll.u32 %s2971_s2, 4  ;;  %s46_s21 = sadd.s32 1, %s2296_s17  ;;  %s193_s9 = int_to_ptr.hbm [resolvable:$true] %s192_s9 }
  0x1a   : > { %2025 = dma.hbm_to_vmem [thread:$0]  (!%p2020_p10), %s193_s9, 64, %s195_s13, [#allocation6]  }
  0x1b   : > { %p39_p12 = scmp.ge.s32.totalorder %s37_s14, 2  ;;  %p53_p13 = scmp.ne.s32.totalorder %s2296_s17, %s2292_s16 }
  0x1c   : > { %p54_p0 = scmp.eq.s32.totalorder %s2308_s20, 0  ;;  %p2039_p3 = scmp.lt.s32.totalorder %s2308_s20, 2 }
  0x1d   : > { %s2980_s14 = smov (%p39_p12, %s37_s14), 0  ;;  %p2427_p7 = por %p2382_p2, %p53_p13 }
  0x1e   : > { %p2421_p5 = por %p54_p0, %p53_p13  ;;  %s41_s28 = ssub.s32 %s2304_s19, %s2980_s14 }
  0x1f   : > { %s205_s29 = sand.u32 1, %s2296_s17   ;;  %p44_p9 = scmp.eq.s32.totalorder %s41_s28, 0 }
  0x20   : > { %s1743_s5 = sshll.u32 %s205_s29, 7  ;;  %s1954_s6 = sshll.u32 %s2304_s19, 7 }
  0x21   : > { %s2436_s7 = scalar_select %p44_p9, %s2296_s17, %s46_s21  }
  0x22   : > { %s216_s10 = scalar_lea.hbm %s2958_s0, %s1954_s6  ;;  %s209_s12 = scalar_lea.vmem [#allocation2], %s1743_s5 }
  0x23   : > { %s217_s11 = sshll.u32 %s216_s10, 4  ;;  %s219_s13 = sshll.u32 %s209_s12, 4  ;;  %s218_s11 = int_to_ptr.hbm [resolvable:$true] %s217_s11  ;;  %s220_s13 = int_to_ptr.vmem [resolvable:$true] %s219_s13 }
  0x24   : > { %p2027_p2 = pnand %p2039_p3, %p2421_p5  ;;  %s206_s24 = scalar_lea.sflag [#allocation3], %s205_s29 }
  0x25   : > { %s2314_s1 = smov 64   ;;  %s2315_s2 = smov 4  }
  0x26   : > { %2029 = dma.hbm_to_vmem [thread:$0]  (!%p2027_p2), %s218_s11, 2048, %s220_s13, %s206_s24, %s2314_s1, %s2314_s1, %s2315_s2  }
  0x27   : > { %231 = sbr.rel (%p2401_p8) target bundleno = 494 (0x1ee), region = 32  ;;  %s2448_s21 = sand.u32 (!%p2401_p8), 1, %s2292_s16  }
  0x28   : > { %s1747_s28 = sshll.u32 (!%p2401_p8), %s2448_s21, 7  ;;  %s234_s5 = scalar_lea.sflag (!%p2401_p8), [#allocation3], %s2448_s21 }
  0x29   : > { %s2452_s6 = scalar_lea.vmem (!%p2401_p8), [#allocation2], %s1747_s28 }
  0x2c   : > { %2271 = dma.done.wait (%p2388_p4), %s234_s5, 2048  }
  0x2d   : > { %2273 = vsyncadd (%p2388_p4), %s234_s5, 4294965248 }
  0x2e   : > { %2275 = dma.done.wait (%p2378_p1), [#allocation6], 4160  }
  0x2f   : > { %2277 = vsyncadd (%p2378_p1), [#allocation6], 4294963136  ;;  %v1930_v0 = vld [vmem:[#allocation5 + $0xe0] sm:$0xf]  ;;  %v2001_v1 = vld [vmem:[#allocation5 + $0xec] sm:$0xf0] }
  0x30   : > { %v1999_v2 = vld [vmem:[#allocation5 + $0xe4] sm:$0xf]  ;;  %v1931_v3 = vor.u32 %v2001_v1, %v1930_v0  ;;  %v1932_v4 = vld [vmem:[#allocation5 + $0xf0] sm:$0xf0]  ;;  %v1938_v5 = vld [vmem:[#allocation5 + $0xe8] sm:$0xf] }
  0x31   : > { %v2002_v6 = vld [vmem:[#allocation5 + $0xf4] sm:$0xf0]  ;;  %v1935_v7 = vor.u32 %v1999_v2, %v1932_v4  ;;  %v2000_v9 = vld [vmem:[#allocation5 + $0xec] sm:$0xf]  ;;  %v1940_v10 = vld [vmem:[#allocation5 + $0xf8] sm:$0xf0] }
  0x32   : > { %v1939_v8 = vor.u32 %v2002_v6, %v1938_v5  ;;  %v1914_v11 = vld [vmem:[#allocation5 + $0xc0] sm:$0xf]  ;;  %610 = vmatpush.bf16.msra.mxu0 %v1931_v3  ;;  %v1943_v12 = vor.u32 %v2000_v9, %v1940_v10  ;;  %v1997_v13 = vld [vmem:[#allocation5 + $0xcc] sm:$0xf0]  ;;  %v1995_v14 = vld [vmem:[#allocation5 + $0xc4] sm:$0xf] }
  0x33   : > { %v1916_v15 = vld [vmem:[#allocation5 + $0xd0] sm:$0xf0]  ;;  %699 = vmatpush.bf16.msra.mxu1 %v1935_v7  ;;  %v1915_v16 = vor.u32 %v1997_v13, %v1914_v11  ;;  %v1922_v18 = vld [vmem:[#allocation5 + $0xc8] sm:$0xf]  ;;  %v1998_v19 = vld [vmem:[#allocation5 + $0xd4] sm:$0xf0] }
  0x34   : > { %788 = vmatpush.bf16.msra.mxu2 %v1939_v8  ;;  %v1919_v17 = vor.u32 %v1995_v14, %v1916_v15  ;;  %v1996_v20 = vld [vmem:[#allocation5 + $0xcc] sm:$0xf]  ;;  %877 = vmatpush.bf16.msra.mxu3 %v1943_v12  ;;  %v1923_v21 = vor.u32 %v1998_v19, %v1922_v18  ;;  %v1924_v22 = vld [vmem:[#allocation5 + $0xd8] sm:$0xf0]  ;;  %v1898_v23 = vld [vmem:[#allocation5 + $0xa0] sm:$0xf] }
  0x35   : > { %v1993_v24 = vld [vmem:[#allocation5 + $0xac] sm:$0xf0]  ;;  %v1927_v25 = vor.u32 %v1996_v20, %v1924_v22  ;;  %v1991_v26 = vld [vmem:[#allocation5 + $0xa4] sm:$0xf]  ;;  %v1900_v27 = vld [vmem:[#allocation5 + $0xb0] sm:$0xf0] }
  0x36   : > { %v1906_v28 = vld [vmem:[#allocation5 + $0xa8] sm:$0xf]  ;;  %611 = vmatpush.bf16.msra.mxu0 %v1915_v16  ;;  %v1899_v29 = vor.u32 %v1993_v24, %v1898_v23  ;;  %v1994_v30 = vld [vmem:[#allocation5 + $0xb4] sm:$0xf0]  ;;  %v1992_v31 = vld [vmem:[#allocation5 + $0xac] sm:$0xf]  ;;  %v1903_v33 = vor.u32 %v1991_v26, %v1900_v27 }
  0x37   : > { %v1908_v32 = vld [vmem:[#allocation5 + $0xb8] sm:$0xf0]  ;;  %700 = vmatpush.bf16.msra.mxu1 %v1919_v17  ;;  %v1907_v34 = vor.u32 %v1994_v30, %v1906_v28  ;;  %v1882_v35 = vld [vmem:[#allocation5 + $0x80] sm:$0xf]  ;;  %v1989_v36 = vld [vmem:[#allocation5 + $0x8c] sm:$0xf0] }
  0x38   : > { %789 = vmatpush.bf16.msra.mxu2 %v1923_v21  ;;  %v1987_v37 = vld [vmem:[#allocation5 + $0x84] sm:$0xf]  ;;  %878 = vmatpush.bf16.msra.mxu3 %v1927_v25  ;;  %v1911_v38 = vor.u32 %v1992_v31, %v1908_v32  ;;  %v1884_v39 = vld [vmem:[#allocation5 + $0x90] sm:$0xf0]  ;;  %v1890_v40 = vld [vmem:[#allocation5 + $0x88] sm:$0xf]  ;;  %v1883_v44 = vor.u32 %v1989_v36, %v1882_v35 }
  0x39   : > { %v1990_v41 = vld [vmem:[#allocation5 + $0x94] sm:$0xf0]  ;;  %v1988_v42 = vld [vmem:[#allocation5 + $0x8c] sm:$0xf]  ;;  %v1892_v43 = vld [vmem:[#allocation5 + $0x98] sm:$0xf0]  ;;  %v1887_v45 = vor.u32 %v1987_v37, %v1884_v39 }
  0x3a   : > { %612 = vmatpush.bf16.msra.mxu0 %v1899_v29  ;;  %v1891_v46 = vor.u32 %v1990_v41, %v1890_v40  ;;  %v1866_v47 = vld [vmem:[#allocation5 + $0x60] sm:$0xf]  ;;  %v1985_v48 = vld [vmem:[#allocation5 + $0x6c] sm:$0xf0]  ;;  %v1983_v49 = vld [vmem:[#allocation5 + $0x64] sm:$0xf]  ;;  %v1895_v50 = vor.u32 %v1988_v42, %v1892_v43 }
  0x3b   : > { %701 = vmatpush.bf16.msra.mxu1 %v1903_v33  ;;  %v1868_v51 = vld [vmem:[#allocation5 + $0x70] sm:$0xf0]  ;;  %v1874_v52 = vld [vmem:[#allocation5 + $0x68] sm:$0xf]  ;;  %v1986_v53 = vld [vmem:[#allocation5 + $0x74] sm:$0xf0]  ;;  %v1867_v56 = vor.u32 %v1985_v48, %v1866_v47 }
  0x3c   : > { %790 = vmatpush.bf16.msra.mxu2 %v1907_v34  ;;  %879 = vmatpush.bf16.msra.mxu3 %v1911_v38  ;;  %v1984_v54 = vld [vmem:[#allocation5 + $0x6c] sm:$0xf]  ;;  %v1876_v55 = vld [vmem:[#allocation5 + $0x78] sm:$0xf0]  ;;  %v1871_v57 = vor.u32 %v1983_v49, %v1868_v51  ;;  %v1875_v58 = vor.u32 %v1986_v53, %v1874_v52  ;;  %v1850_v59 = vld [vmem:[#allocation5 + $0x40] sm:$0xf] }
  0x3d   : > { %v1981_v60 = vld [vmem:[#allocation5 + $0x4c] sm:$0xf0]  ;;  %v1979_v61 = vld [vmem:[#allocation5 + $0x44] sm:$0xf]  ;;  %v1879_v62 = vor.u32 %v1984_v54, %v1876_v55  ;;  %v1852_v63 = vld [vmem:[#allocation5 + $0x50] sm:$0xf0] }
  0x3e   : > { %613 = vmatpush.bf16.msra.mxu0 %v1883_v44  ;;  %v1858_v0 = vld [vmem:[#allocation5 + $0x48] sm:$0xf]  ;;  %v1982_v1 = vld [vmem:[#allocation5 + $0x54] sm:$0xf0]  ;;  %v1980_v2 = vld [vmem:[#allocation5 + $0x4c] sm:$0xf]  ;;  %v1851_v4 = vor.u32 %v1981_v60, %v1850_v59  ;;  %v1855_v5 = vor.u32 %v1979_v61, %v1852_v63 }
  0x3f   : > { %702 = vmatpush.bf16.msra.mxu1 %v1887_v45  ;;  %v1860_v3 = vld [vmem:[#allocation5 + $0x58] sm:$0xf0]  ;;  %v1859_v6 = vor.u32 %v1982_v1, %v1858_v0  ;;  %v1834_v7 = vld [vmem:[#allocation5 + $0x20] sm:$0xf]  ;;  %v1977_v8 = vld [vmem:[#allocation5 + $0x2c] sm:$0xf0] }
  0x40   : > { %791 = vmatpush.bf16.msra.mxu2 %v1891_v46  ;;  %880 = vmatpush.bf16.msra.mxu3 %v1895_v50  ;;  %v1975_v9 = vld [vmem:[#allocation5 + $0x24] sm:$0xf]  ;;  %v1863_v10 = vor.u32 %v1980_v2, %v1860_v3  ;;  %v1836_v11 = vld [vmem:[#allocation5 + $0x30] sm:$0xf0]  ;;  %v1842_v12 = vld [vmem:[#allocation5 + $0x28] sm:$0xf]  ;;  %v1835_v16 = vor.u32 %v1977_v8, %v1834_v7 }
  0x41   : > { %v1978_v13 = vld [vmem:[#allocation5 + $0x34] sm:$0xf0]  ;;  %v1976_v14 = vld [vmem:[#allocation5 + $0x2c] sm:$0xf]  ;;  %v1844_v15 = vld [vmem:[#allocation5 + $0x38] sm:$0xf0]  ;;  %v1839_v17 = vor.u32 %v1975_v9, %v1836_v11 }
  0x42   : > { %614 = vmatpush.bf16.msra.mxu0 %v1867_v56  ;;  %v1843_v18 = vor.u32 %v1978_v13, %v1842_v12  ;;  %v1818_v19 = vld [vmem:[#allocation5] sm:$0xf]  ;;  %v1973_v20 = vld [vmem:[#allocation5 + $0xc] sm:$0xf0]  ;;  %v1971_v21 = vld [vmem:[#allocation5 + $0x4] sm:$0xf]  ;;  %v1847_v22 = vor.u32 %v1976_v14, %v1844_v15 }
  0x43   : > { %703 = vmatpush.bf16.msra.mxu1 %v1871_v57  ;;  %v1820_v23 = vld [vmem:[#allocation5 + $0x10] sm:$0xf0]  ;;  %v1826_v24 = vld [vmem:[#allocation5 + $0x8] sm:$0xf]  ;;  %v1974_v25 = vld [vmem:[#allocation5 + $0x14] sm:$0xf0]  ;;  %v1819_v28 = vor.u32 %v1973_v20, %v1818_v19 }
  0x44   : > { %792 = vmatpush.bf16.msra.mxu2 %v1875_v58  ;;  %881 = vmatpush.bf16.msra.mxu3 %v1879_v62  ;;  %v1972_v26 = vld [vmem:[#allocation5 + $0xc] sm:$0xf]  ;;  %v1828_v27 = vld [vmem:[#allocation5 + $0x18] sm:$0xf0]  ;;  %v1823_v29 = vor.u32 %v1971_v21, %v1820_v23  ;;  %v1827_v30 = vor.u32 %v1974_v25, %v1826_v24  ;;  %v1955_v32 = vld [vmem:[%s2452_s6] sm:$0xff]  ;;  %s1750_s1 = sshll.u32 %s2448_s21, 9 }
  0x45   : > { %v1831_v31 = vor.u32 %v1972_v26, %v1828_v27  ;;  %v1956_v33 = vld [vmem:[%s2452_s6 + $0x8] sm:$0xff]  ;;  %v1957_v34 = vld [vmem:[%s2452_s6 + $0x10] sm:$0xff]  ;;  %v1958_v35 = vld [vmem:[%s2452_s6 + $0x18] sm:$0xff]  ;;  %s2482_s2 = scalar_lea.vmem [#allocation8], %s1750_s1  ;;  %s1751_s23 = sshll.u32 %s2448_s21, 3 }
  0x46   : > { %615 = vmatpush.bf16.msra.mxu0 %v1851_v4  ;;  %v1959_v36 = vld [vmem:[%s2452_s6 + $0x20] sm:$0xff]  ;;  %v1960_v37 = vld [vmem:[%s2452_s6 + $0x28] sm:$0xff]  ;;  %v1961_v38 = vld [vmem:[%s2452_s6 + $0x30] sm:$0xff]  ;;  %s2841_s25 = scalar_lea.vmem [#allocation9], %s1751_s23  ;;  %s2003_s30 = sshll.u32 %s2300_s18, 9 }
  0x47   : > { %704 = vmatpush.bf16.msra.mxu1 %v1855_v5  ;;  %v1962_v39 = vld [vmem:[%s2452_s6 + $0x38] sm:$0xff]  ;;  %v344_v40 = vld [vmem:[#allocation7] sm:$0xf]  ;;  %s2883_s8 = scalar_lea.hbm %s2961_s3, %s2003_s30  ;;  %s1580_s9 = sshll.u32 %s2482_s2, 4  ;;  %s2890_s9 = int_to_ptr.vmem [resolvable:$true] %s1580_s9 }
  0x48   : > { %793 = vmatpush.bf16.msra.mxu2 %v1859_v6  ;;  %882 = vmatpush.bf16.msra.mxu3 %v1863_v10  ;;  %v2470_v41 = vperm.slane %v344_v40, 0  ;;  %v2472_v42 = vperm.slane %v344_v40, 1  ;;  %v1963_v43 = vld [vmem:[%s2452_s6 + $0x40] sm:$0xff]  ;;  %v2478_v49 = vperm.slane %v344_v40, 2  ;;  %v2480_v50 = vperm.slane %v344_v40, 3  ;;  %v1964_v6 = vld [vmem:[%s2452_s6 + $0x48] sm:$0xff] }
  0x49   : > { %s1582_s10 = sshll.u32 %s2883_s8, 4  ;;  %s1560_s11 = scalar_lea.sflag [#allocation4], %s2448_s21  ;;  %s2892_s10 = int_to_ptr.hbm [resolvable:$true] %s1582_s10 }
  0x4a   : > { %616 = vmatpush.bf16.msra.mxu0 %v1835_v16  ;;  %s2204_s12 = sshra.s32 %s2892_s10, 4  ;;  %s2210_s5 = scalar_lea.hbm %s2961_s3, 1024  ;;  %s2205_s12 = int_to_ptr.hbm [resolvable:$true] %s2204_s12 }
  0x4b   : > { %705 = vmatpush.bf16.msra.mxu1 %v1839_v17  ;;  %s2206_s13 = scalar_lea.hbm %s2205_s12, 512  ;;  %p2211_p10 = scmp.lt.s32.totalorder %s2205_s12, %s2961_s3 }
  0x4c   : > { %794 = vmatpush.bf16.msra.mxu2 %v1843_v18  ;;  %883 = vmatpush.bf16.msra.mxu3 %v1847_v22  ;;  %p2207_p1 = scmp.ne.s32.totalorder %s2205_s12, %s2206_s13  ;;  %p2212_p12 = scmp.lt.s32.totalorder %s2210_s5, %s2206_s13 }
  0x4e   : > { %617 = vmatpush.bf16.msra.mxu0 %v1819_v28  ;;  %p2208_p4 = pnand %p2207_p1, %p2427_p7  ;;  %p2213_p13 = por %p2212_p12, %p2211_p10 }
  0x4f   : > { %706 = vmatpush.bf16.msra.mxu1 %v1823_v29 }
  0x50   : > { %795 = vmatpush.bf16.msra.mxu2 %v1827_v30  ;;  %884 = vmatpush.bf16.msra.mxu3 %v1831_v31  ;;  %p2209_p8 = pneg %p2208_p4 }
  0x51   : > { %618 = vmatmul.bf16.vlgmr.msra.gmra.mxu0 %v1955_v32 }
  0x52   : > { %707 = vmatmul.bf16.vlgmr.msra.gmra.mxu1 %v1955_v32  ;;  %p2214_p0 = pnand %p2213_p13, %p2209_p8 }
  0x53   : > { %796 = vmatmul.bf16.vlgmr.msra.gmra.mxu2 %v1955_v32  ;;  %885 = vmatmul.bf16.vlgmr.msra.gmra.mxu3 %v1955_v32 }
  0x61   : > { %623 = vmatmul.bf16.gmra.mxu0 %v1956_v33 }
  0x62   : > { %712 = vmatmul.bf16.gmra.mxu1 %v1956_v33 }
  0x63   : > { %801 = vmatmul.bf16.gmra.mxu2 %v1956_v33  ;;  %890 = vmatmul.bf16.gmra.mxu3 %v1956_v33 }
  0x71   : > { %628 = vmatmul.bf16.gmra.mxu0 %v1957_v34 }
  0x72   : > { %717 = vmatmul.bf16.gmra.mxu1 %v1957_v34 }
  0x73   : > { %806 = vmatmul.bf16.gmra.mxu2 %v1957_v34  ;;  %895 = vmatmul.bf16.gmra.mxu3 %v1957_v34 }
  0x81   : > { %633 = vmatmul.bf16.gmra.mxu0 %v1958_v35 }
  0x82   : > { %722 = vmatmul.bf16.gmra.mxu1 %v1958_v35 }
  0x83   : > { %811 = vmatmul.bf16.gmra.mxu2 %v1958_v35  ;;  %900 = vmatmul.bf16.gmra.mxu3 %v1958_v35 }
  0x91   : > { %638 = vmatmul.bf16.gmra.mxu0 %v1959_v36 }
  0x92   : > { %727 = vmatmul.bf16.gmra.mxu1 %v1959_v36 }
  0x93   : > { %816 = vmatmul.bf16.gmra.mxu2 %v1959_v36  ;;  %905 = vmatmul.bf16.gmra.mxu3 %v1959_v36 }
  0xa1   : > { %643 = vmatmul.bf16.gmra.mxu0 %v1960_v37 }
  0xa2   : > { %732 = vmatmul.bf16.gmra.mxu1 %v1960_v37 }
  0xa3   : > { %821 = vmatmul.bf16.gmra.mxu2 %v1960_v37  ;;  %910 = vmatmul.bf16.gmra.mxu3 %v1960_v37 }
  0xb1   : > { %648 = vmatmul.bf16.gmra.mxu0 %v1961_v38 }
  0xb2   : > { %737 = vmatmul.bf16.gmra.mxu1 %v1961_v38 }
  0xb3   : > { %826 = vmatmul.bf16.gmra.mxu2 %v1961_v38  ;;  %915 = vmatmul.bf16.gmra.mxu3 %v1961_v38 }
  0xc1   : > { %653 = vmatmul.bf16.gmra.mxu0 %v1962_v39 }
  0xc2   : > { %742 = vmatmul.bf16.gmra.mxu1 %v1962_v39 }
  0xc3   : > { %831 = vmatmul.bf16.gmra.mxu2 %v1962_v39  ;;  %920 = vmatmul.bf16.gmra.mxu3 %v1962_v39 }
  0xce   : > { %v619_v44 = vpop.f32.mrf.mxu0 }
  0xcf   : > { %v620_v45 = vadd.f32 %v619_v44, %v2470_v41  ;;  %v708_v46 = vpop.f32.mrf.mxu1 }
  0xd0   : > { %v709_v47 = vadd.f32 %v708_v46, %v2472_v42 }
  0xd1   : > { %658 = vmatmul.bf16.gmra.mxu0 %v1963_v43  ;;  %v1270_v55 = vmul.f32 %v620_v45, %v620_v45 }
  0xd2   : > { %v966_v48 = vpack.c.bf16 %v709_v47, %v620_v45  ;;  %747 = vmatmul.bf16.gmra.mxu1 %v1963_v43  ;;  %v1271_v63 = vmul.f32 %v709_v47, %v709_v47 }
  0xd3   : > { %836 = vmatmul.bf16.gmra.mxu2 %v1963_v43  ;;  %925 = vmatmul.bf16.gmra.mxu3 %v1963_v43 }
  0xd4   : > { %1030 = vst [vmem:[%s2482_s2] sm:$0xff] %v966_v48 }
  0xd6   : > { %v797_v51 = vpop.f32.mrf.mxu2  ;;  %v886_v53 = vpop.f32.mrf.mxu3 }
  0xd7   : > { %v798_v52 = vadd.f32 %v797_v51, %v2478_v49  ;;  %v621_v54 = vpop.f32.mrf.mxu0  ;;  %v887_v56 = vadd.f32 %v886_v53, %v2480_v50  ;;  %v710_v58 = vpop.f32.mrf.mxu1 }
  0xd8   : > { %v622_v57 = vadd.f32 %v621_v54, %v2470_v41  ;;  %v711_v59 = vadd.f32 %v710_v58, %v2472_v42 }
  0xd9   : > { %v967_v60 = vpack.c.bf16 %v887_v56, %v798_v52  ;;  %v1272_v10 = vmul.f32 %v798_v52, %v798_v52  ;;  %v1273_v14 = vmul.f32 %v887_v56, %v887_v56 }
  0xda   : > { %v1100_v61 = vadd.f32 %v622_v57, %v620_v45  ;;  %v1274_v62 = vmul.f32 %v622_v57, %v622_v57  ;;  %v968_v0 = vpack.c.bf16 %v711_v59, %v622_v57  ;;  %v1137_v1 = vadd.f32 %v711_v59, %v709_v47  ;;  %v1965_v57 = vld [vmem:[%s2452_s6 + $0x50] sm:$0xff] }
  0xdb   : > { %v1275_v2 = vmul.f32 %v711_v59, %v711_v59  ;;  %1031 = vst [vmem:[%s2482_s2 + $0x8] sm:$0xff] %v967_v60 }
  0xdc   : > { %v1398_v3 = vadd.f32 %v1274_v62, %v1270_v55  ;;  %1032 = vst [vmem:[%s2482_s2 + $0x10] sm:$0xff] %v968_v0 }
  0xdd   : > { %v1435_v4 = vadd.f32 %v1275_v2, %v1271_v63 }
  0xde   : > { %v799_v5 = vpop.f32.mrf.mxu2  ;;  %v888_v8 = vpop.f32.mrf.mxu3 }
  0xdf   : > { %v800_v7 = vadd.f32 %v799_v5, %v2478_v49  ;;  %v624_v9 = vpop.f32.mrf.mxu0  ;;  %v889_v11 = vadd.f32 %v888_v8, %v2480_v50  ;;  %v713_v13 = vpop.f32.mrf.mxu1 }
  0xe0   : > { %v625_v12 = vadd.f32 %v624_v9, %v2470_v41  ;;  %v714_v17 = vadd.f32 %v713_v13, %v2472_v42 }
  0xe1   : > { %v1174_v15 = vadd.f32 %v800_v7, %v798_v52  ;;  %v1276_v16 = vmul.f32 %v800_v7, %v800_v7  ;;  %v969_v18 = vpack.c.bf16 %v889_v11, %v800_v7  ;;  %v1211_v19 = vadd.f32 %v889_v11, %v887_v56  ;;  %663 = vmatmul.bf16.gmra.mxu0 %v1964_v6 }
  0xe2   : > { %v1277_v20 = vmul.f32 %v889_v11, %v889_v11  ;;  %v1101_v21 = vadd.f32 %v1100_v61, %v625_v12  ;;  %v1278_v23 = vmul.f32 %v625_v12, %v625_v12  ;;  %v970_v24 = vpack.c.bf16 %v714_v17, %v625_v12  ;;  %752 = vmatmul.bf16.gmra.mxu1 %v1964_v6 }
  0xe3   : > { %v1472_v22 = vadd.f32 %v1276_v16, %v1272_v10  ;;  %v1138_v25 = vadd.f32 %v1137_v1, %v714_v17  ;;  %1033 = vst [vmem:[%s2482_s2 + $0x18] sm:$0xff] %v969_v18  ;;  %v1279_v27 = vmul.f32 %v714_v17, %v714_v17  ;;  %841 = vmatmul.bf16.gmra.mxu2 %v1964_v6 }
  0xe4   : > { %v1509_v26 = vadd.f32 %v1277_v20, %v1273_v14  ;;  %930 = vmatmul.bf16.gmra.mxu3 %v1964_v6  ;;  %v1399_v28 = vadd.f32 %v1398_v3, %v1278_v23  ;;  %1034 = vst [vmem:[%s2482_s2 + $0x20] sm:$0xff] %v970_v24 }
  0xe5   : > { %v1436_v29 = vadd.f32 %v1435_v4, %v1279_v27 }
  0xe6   : > { %v802_v30 = vpop.f32.mrf.mxu2  ;;  %v891_v32 = vpop.f32.mrf.mxu3 }
  0xe7   : > { %v803_v31 = vadd.f32 %v802_v30, %v2478_v49  ;;  %v626_v33 = vpop.f32.mrf.mxu0  ;;  %v892_v34 = vadd.f32 %v891_v32, %v2480_v50  ;;  %v715_v36 = vpop.f32.mrf.mxu1 }
  0xe8   : > { %v627_v35 = vadd.f32 %v626_v33, %v2470_v41  ;;  %v716_v39 = vadd.f32 %v715_v36, %v2472_v42 }
  0xe9   : > { %v1175_v37 = vadd.f32 %v1174_v15, %v803_v31  ;;  %v1280_v38 = vmul.f32 %v803_v31, %v803_v31  ;;  %v971_v40 = vpack.c.bf16 %v892_v34, %v803_v31  ;;  %v1212_v43 = vadd.f32 %v1211_v19, %v892_v34 }
  0xea   : > { %v1281_v44 = vmul.f32 %v892_v34, %v892_v34  ;;  %v1102_v45 = vadd.f32 %v1101_v21, %v627_v35  ;;  %v1282_v47 = vmul.f32 %v627_v35, %v627_v35  ;;  %v972_v48 = vpack.c.bf16 %v716_v39, %v627_v35 }
  0xeb   : > { %v1473_v46 = vadd.f32 %v1472_v22, %v1280_v38  ;;  %v1139_v51 = vadd.f32 %v1138_v25, %v716_v39  ;;  %1035 = vst [vmem:[%s2482_s2 + $0x28] sm:$0xff] %v971_v40  ;;  %v1283_v53 = vmul.f32 %v716_v39, %v716_v39  ;;  %v1966_v38 = vld [vmem:[%s2452_s6 + $0x58] sm:$0xff] }
  0xec   : > { %v1510_v52 = vadd.f32 %v1509_v26, %v1281_v44  ;;  %v1400_v54 = vadd.f32 %v1399_v28, %v1282_v47  ;;  %1036 = vst [vmem:[%s2482_s2 + $0x30] sm:$0xff] %v972_v48 }
  0xed   : > { %v1437_v55 = vadd.f32 %v1436_v29, %v1283_v53 }
  0xee   : > { %v804_v56 = vpop.f32.mrf.mxu2  ;;  %v893_v59 = vpop.f32.mrf.mxu3 }
  0xef   : > { %v805_v58 = vadd.f32 %v804_v56, %v2478_v49  ;;  %v629_v60 = vpop.f32.mrf.mxu0  ;;  %v894_v61 = vadd.f32 %v893_v59, %v2480_v50  ;;  %v718_v63 = vpop.f32.mrf.mxu1 }
  0xf0   : > { %v630_v62 = vadd.f32 %v629_v60, %v2470_v41  ;;  %v719_v2 = vadd.f32 %v718_v63, %v2472_v42 }
  0xf1   : > { %v1176_v0 = vadd.f32 %v1175_v37, %v805_v58  ;;  %v1284_v1 = vmul.f32 %v805_v58, %v805_v58  ;;  %v973_v3 = vpack.c.bf16 %v894_v61, %v805_v58  ;;  %v1213_v4 = vadd.f32 %v1212_v43, %v894_v61  ;;  %668 = vmatmul.bf16.gmra.mxu0 %v1965_v57 }
  0xf2   : > { %v1285_v5 = vmul.f32 %v894_v61, %v894_v61  ;;  %v1103_v6 = vadd.f32 %v1102_v45, %v630_v62  ;;  %v1286_v8 = vmul.f32 %v630_v62, %v630_v62  ;;  %v974_v9 = vpack.c.bf16 %v719_v2, %v630_v62  ;;  %757 = vmatmul.bf16.gmra.mxu1 %v1965_v57 }
  0xf3   : > { %v1474_v7 = vadd.f32 %v1473_v46, %v1284_v1  ;;  %v1140_v10 = vadd.f32 %v1139_v51, %v719_v2  ;;  %1037 = vst [vmem:[%s2482_s2 + $0x38] sm:$0xff] %v973_v3  ;;  %v1287_v12 = vmul.f32 %v719_v2, %v719_v2  ;;  %846 = vmatmul.bf16.gmra.mxu2 %v1965_v57 }
  0xf4   : > { %v1511_v11 = vadd.f32 %v1510_v52, %v1285_v5  ;;  %935 = vmatmul.bf16.gmra.mxu3 %v1965_v57  ;;  %v1401_v13 = vadd.f32 %v1400_v54, %v1286_v8  ;;  %1038 = vst [vmem:[%s2482_s2 + $0x40] sm:$0xff] %v974_v9 }
  0xf5   : > { %v1438_v14 = vadd.f32 %v1437_v55, %v1287_v12 }
  0xf6   : > { %v807_v15 = vpop.f32.mrf.mxu2  ;;  %v896_v17 = vpop.f32.mrf.mxu3 }
  0xf7   : > { %v808_v16 = vadd.f32 %v807_v15, %v2478_v49  ;;  %v631_v18 = vpop.f32.mrf.mxu0  ;;  %v897_v19 = vadd.f32 %v896_v17, %v2480_v50  ;;  %v720_v21 = vpop.f32.mrf.mxu1 }
  0xf8   : > { %v632_v20 = vadd.f32 %v631_v18, %v2470_v41  ;;  %v721_v24 = vadd.f32 %v720_v21, %v2472_v42 }
  0xf9   : > { %v1177_v22 = vadd.f32 %v1176_v0, %v808_v16  ;;  %v1288_v23 = vmul.f32 %v808_v16, %v808_v16  ;;  %v975_v25 = vpack.c.bf16 %v897_v19, %v808_v16  ;;  %v1214_v26 = vadd.f32 %v1213_v4, %v897_v19 }
  0xfa   : > { %v1289_v27 = vmul.f32 %v897_v19, %v897_v19  ;;  %v1104_v28 = vadd.f32 %v1103_v6, %v632_v20  ;;  %v1290_v30 = vmul.f32 %v632_v20, %v632_v20  ;;  %v976_v31 = vpack.c.bf16 %v721_v24, %v632_v20 }
  0xfb   : > { %v1475_v29 = vadd.f32 %v1474_v7, %v1288_v23  ;;  %v1141_v32 = vadd.f32 %v1140_v10, %v721_v24  ;;  %1039 = vst [vmem:[%s2482_s2 + $0x48] sm:$0xff] %v975_v25  ;;  %v1291_v34 = vmul.f32 %v721_v24, %v721_v24  ;;  %v1967_v23 = vld [vmem:[%s2452_s6 + $0x60] sm:$0xff] }
  0xfc   : > { %v1512_v33 = vadd.f32 %v1511_v11, %v1289_v27  ;;  %v1402_v35 = vadd.f32 %v1401_v13, %v1290_v30  ;;  %1040 = vst [vmem:[%s2482_s2 + $0x50] sm:$0xff] %v976_v31 }
  0xfd   : > { %v1439_v36 = vadd.f32 %v1438_v14, %v1291_v34 }
  0xfe   : > { %v809_v37 = vpop.f32.mrf.mxu2  ;;  %v898_v40 = vpop.f32.mrf.mxu3 }
  0xff   : > { %v810_v39 = vadd.f32 %v809_v37, %v2478_v49  ;;  %v634_v43 = vpop.f32.mrf.mxu0  ;;  %v899_v44 = vadd.f32 %v898_v40, %v2480_v50  ;;  %v723_v46 = vpop.f32.mrf.mxu1 }
 0x100   : > { %v635_v45 = vadd.f32 %v634_v43, %v2470_v41  ;;  %v724_v51 = vadd.f32 %v723_v46, %v2472_v42 }
 0x101   : > { %v1178_v47 = vadd.f32 %v1177_v22, %v810_v39  ;;  %v1292_v48 = vmul.f32 %v810_v39, %v810_v39  ;;  %v977_v52 = vpack.c.bf16 %v899_v44, %v810_v39  ;;  %v1215_v53 = vadd.f32 %v1214_v26, %v899_v44  ;;  %673 = vmatmul.bf16.gmra.mxu0 %v1966_v38 }
 0x102   : > { %v1293_v54 = vmul.f32 %v899_v44, %v899_v44  ;;  %v1105_v55 = vadd.f32 %v1104_v28, %v635_v45  ;;  %v1294_v57 = vmul.f32 %v635_v45, %v635_v45  ;;  %v978_v58 = vpack.c.bf16 %v724_v51, %v635_v45  ;;  %762 = vmatmul.bf16.gmra.mxu1 %v1966_v38 }
 0x103   : > { %v1476_v56 = vadd.f32 %v1475_v29, %v1292_v48  ;;  %v1142_v59 = vadd.f32 %v1141_v32, %v724_v51  ;;  %1041 = vst [vmem:[%s2482_s2 + $0x58] sm:$0xff] %v977_v52  ;;  %v1295_v61 = vmul.f32 %v724_v51, %v724_v51  ;;  %851 = vmatmul.bf16.gmra.mxu2 %v1966_v38 }
 0x104   : > { %v1513_v60 = vadd.f32 %v1512_v33, %v1293_v54  ;;  %940 = vmatmul.bf16.gmra.mxu3 %v1966_v38  ;;  %v1403_v62 = vadd.f32 %v1402_v35, %v1294_v57  ;;  %1042 = vst [vmem:[%s2482_s2 + $0x60] sm:$0xff] %v978_v58 }
 0x105   : > { %v1440_v63 = vadd.f32 %v1439_v36, %v1295_v61 }
 0x106   : > { %v812_v0 = vpop.f32.mrf.mxu2  ;;  %v901_v2 = vpop.f32.mrf.mxu3 }
 0x107   : > { %v813_v1 = vadd.f32 %v812_v0, %v2478_v49  ;;  %v636_v3 = vpop.f32.mrf.mxu0  ;;  %v902_v4 = vadd.f32 %v901_v2, %v2480_v50  ;;  %v725_v6 = vpop.f32.mrf.mxu1 }
 0x108   : > { %v637_v5 = vadd.f32 %v636_v3, %v2470_v41  ;;  %v726_v9 = vadd.f32 %v725_v6, %v2472_v42 }
 0x109   : > { %v1179_v7 = vadd.f32 %v1178_v47, %v813_v1  ;;  %v1296_v8 = vmul.f32 %v813_v1, %v813_v1  ;;  %v979_v10 = vpack.c.bf16 %v902_v4, %v813_v1  ;;  %v1216_v11 = vadd.f32 %v1215_v53, %v902_v4 }
 0x10a   : > { %v1297_v12 = vmul.f32 %v902_v4, %v902_v4  ;;  %v1106_v13 = vadd.f32 %v1105_v55, %v637_v5  ;;  %v1298_v15 = vmul.f32 %v637_v5, %v637_v5  ;;  %v980_v16 = vpack.c.bf16 %v726_v9, %v637_v5 }
 0x10b   : > { %v1477_v14 = vadd.f32 %v1476_v56, %v1296_v8  ;;  %v1143_v17 = vadd.f32 %v1142_v59, %v726_v9  ;;  %1043 = vst [vmem:[%s2482_s2 + $0x68] sm:$0xff] %v979_v10  ;;  %v1299_v19 = vmul.f32 %v726_v9, %v726_v9  ;;  %v1968_v8 = vld [vmem:[%s2452_s6 + $0x68] sm:$0xff] }
 0x10c   : > { %v1514_v18 = vadd.f32 %v1513_v60, %v1297_v12  ;;  %v1404_v20 = vadd.f32 %v1403_v62, %v1298_v15  ;;  %1044 = vst [vmem:[%s2482_s2 + $0x70] sm:$0xff] %v980_v16 }
 0x10d   : > { %v1441_v21 = vadd.f32 %v1440_v63, %v1299_v19 }
 0x10e   : > { %v814_v22 = vpop.f32.mrf.mxu2  ;;  %v903_v25 = vpop.f32.mrf.mxu3 }
 0x10f   : > { %v815_v24 = vadd.f32 %v814_v22, %v2478_v49  ;;  %v639_v26 = vpop.f32.mrf.mxu0  ;;  %v904_v27 = vadd.f32 %v903_v25, %v2480_v50  ;;  %v728_v29 = vpop.f32.mrf.mxu1 }
 0x110   : > { %v640_v28 = vadd.f32 %v639_v26, %v2470_v41  ;;  %v729_v32 = vadd.f32 %v728_v29, %v2472_v42 }
 0x111   : > { %v1180_v30 = vadd.f32 %v1179_v7, %v815_v24  ;;  %v1300_v31 = vmul.f32 %v815_v24, %v815_v24  ;;  %v981_v33 = vpack.c.bf16 %v904_v27, %v815_v24  ;;  %v1217_v34 = vadd.f32 %v1216_v11, %v904_v27  ;;  %678 = vmatmul.bf16.gmra.mxu0 %v1967_v23 }
 0x112   : > { %v1301_v35 = vmul.f32 %v904_v27, %v904_v27  ;;  %v1107_v36 = vadd.f32 %v1106_v13, %v640_v28  ;;  %v1302_v38 = vmul.f32 %v640_v28, %v640_v28  ;;  %v982_v39 = vpack.c.bf16 %v729_v32, %v640_v28  ;;  %767 = vmatmul.bf16.gmra.mxu1 %v1967_v23 }
 0x113   : > { %v1478_v37 = vadd.f32 %v1477_v14, %v1300_v31  ;;  %v1144_v40 = vadd.f32 %v1143_v17, %v729_v32  ;;  %1045 = vst [vmem:[%s2482_s2 + $0x78] sm:$0xff] %v981_v33  ;;  %v1303_v44 = vmul.f32 %v729_v32, %v729_v32  ;;  %856 = vmatmul.bf16.gmra.mxu2 %v1967_v23 }
 0x114   : > { %v1515_v43 = vadd.f32 %v1514_v18, %v1301_v35  ;;  %945 = vmatmul.bf16.gmra.mxu3 %v1967_v23  ;;  %v1405_v45 = vadd.f32 %v1404_v20, %v1302_v38  ;;  %1046 = vst [vmem:[%s2482_s2 + $0x80] sm:$0xff] %v982_v39 }
 0x115   : > { %v1442_v46 = vadd.f32 %v1441_v21, %v1303_v44 }
 0x116   : > { %v817_v47 = vpop.f32.mrf.mxu2  ;;  %v906_v51 = vpop.f32.mrf.mxu3 }
 0x117   : > { %v818_v48 = vadd.f32 %v817_v47, %v2478_v49  ;;  %v641_v52 = vpop.f32.mrf.mxu0  ;;  %v907_v53 = vadd.f32 %v906_v51, %v2480_v50  ;;  %v730_v55 = vpop.f32.mrf.mxu1 }
 0x118   : > { %v642_v54 = vadd.f32 %v641_v52, %v2470_v41  ;;  %v731_v58 = vadd.f32 %v730_v55, %v2472_v42 }
 0x119   : > { %v1181_v56 = vadd.f32 %v1180_v30, %v818_v48  ;;  %v1304_v57 = vmul.f32 %v818_v48, %v818_v48  ;;  %v983_v59 = vpack.c.bf16 %v907_v53, %v818_v48  ;;  %v1218_v60 = vadd.f32 %v1217_v34, %v907_v53 }
 0x11a   : > { %v1305_v61 = vmul.f32 %v907_v53, %v907_v53  ;;  %v1108_v62 = vadd.f32 %v1107_v36, %v642_v54  ;;  %v1306_v0 = vmul.f32 %v642_v54, %v642_v54  ;;  %v984_v1 = vpack.c.bf16 %v731_v58, %v642_v54 }
 0x11b   : > { %v1479_v63 = vadd.f32 %v1478_v37, %v1304_v57  ;;  %v1145_v2 = vadd.f32 %v1144_v40, %v731_v58  ;;  %1047 = vst [vmem:[%s2482_s2 + $0x88] sm:$0xff] %v983_v59  ;;  %v1307_v4 = vmul.f32 %v731_v58, %v731_v58  ;;  %v1969_v57 = vld [vmem:[%s2452_s6 + $0x70] sm:$0xff] }
 0x11c   : > { %v1516_v3 = vadd.f32 %v1515_v43, %v1305_v61  ;;  %v1406_v5 = vadd.f32 %v1405_v45, %v1306_v0  ;;  %1048 = vst [vmem:[%s2482_s2 + $0x90] sm:$0xff] %v984_v1 }
 0x11d   : > { %v1443_v6 = vadd.f32 %v1442_v46, %v1307_v4 }
 0x11e   : > { %v819_v7 = vpop.f32.mrf.mxu2  ;;  %v908_v10 = vpop.f32.mrf.mxu3 }
 0x11f   : > { %v820_v9 = vadd.f32 %v819_v7, %v2478_v49  ;;  %v644_v11 = vpop.f32.mrf.mxu0  ;;  %v909_v12 = vadd.f32 %v908_v10, %v2480_v50  ;;  %v733_v14 = vpop.f32.mrf.mxu1 }
 0x120   : > { %v645_v13 = vadd.f32 %v644_v11, %v2470_v41  ;;  %v734_v17 = vadd.f32 %v733_v14, %v2472_v42 }
 0x121   : > { %v1182_v15 = vadd.f32 %v1181_v56, %v820_v9  ;;  %v1308_v16 = vmul.f32 %v820_v9, %v820_v9  ;;  %v985_v18 = vpack.c.bf16 %v909_v12, %v820_v9  ;;  %v1219_v19 = vadd.f32 %v1218_v60, %v909_v12  ;;  %683 = vmatmul.bf16.gmra.mxu0 %v1968_v8 }
 0x122   : > { %v1309_v20 = vmul.f32 %v909_v12, %v909_v12  ;;  %v1109_v21 = vadd.f32 %v1108_v62, %v645_v13  ;;  %v1310_v23 = vmul.f32 %v645_v13, %v645_v13  ;;  %v986_v24 = vpack.c.bf16 %v734_v17, %v645_v13  ;;  %772 = vmatmul.bf16.gmra.mxu1 %v1968_v8 }
 0x123   : > { %v1480_v22 = vadd.f32 %v1479_v63, %v1308_v16  ;;  %v1146_v25 = vadd.f32 %v1145_v2, %v734_v17  ;;  %1049 = vst [vmem:[%s2482_s2 + $0x98] sm:$0xff] %v985_v18  ;;  %v1311_v27 = vmul.f32 %v734_v17, %v734_v17  ;;  %861 = vmatmul.bf16.gmra.mxu2 %v1968_v8 }
 0x124   : > { %v1517_v26 = vadd.f32 %v1516_v3, %v1309_v20  ;;  %950 = vmatmul.bf16.gmra.mxu3 %v1968_v8  ;;  %v1407_v28 = vadd.f32 %v1406_v5, %v1310_v23  ;;  %1050 = vst [vmem:[%s2482_s2 + $0xa0] sm:$0xff] %v986_v24 }
 0x125   : > { %v1444_v29 = vadd.f32 %v1443_v6, %v1311_v27 }
 0x126   : > { %v822_v30 = vpop.f32.mrf.mxu2  ;;  %v911_v32 = vpop.f32.mrf.mxu3 }
 0x127   : > { %v823_v31 = vadd.f32 %v822_v30, %v2478_v49  ;;  %v646_v33 = vpop.f32.mrf.mxu0  ;;  %v912_v34 = vadd.f32 %v911_v32, %v2480_v50  ;;  %v735_v36 = vpop.f32.mrf.mxu1 }
 0x128   : > { %v647_v35 = vadd.f32 %v646_v33, %v2470_v41  ;;  %v736_v39 = vadd.f32 %v735_v36, %v2472_v42 }
 0x129   : > { %v1183_v37 = vadd.f32 %v1182_v15, %v823_v31  ;;  %v1312_v38 = vmul.f32 %v823_v31, %v823_v31  ;;  %v987_v40 = vpack.c.bf16 %v912_v34, %v823_v31  ;;  %v1220_v43 = vadd.f32 %v1219_v19, %v912_v34 }
 0x12a   : > { %v1313_v44 = vmul.f32 %v912_v34, %v912_v34  ;;  %v1110_v45 = vadd.f32 %v1109_v21, %v647_v35  ;;  %v1314_v47 = vmul.f32 %v647_v35, %v647_v35  ;;  %v988_v48 = vpack.c.bf16 %v736_v39, %v647_v35 }
 0x12b   : > { %v1481_v46 = vadd.f32 %v1480_v22, %v1312_v38  ;;  %v1147_v51 = vadd.f32 %v1146_v25, %v736_v39  ;;  %1051 = vst [vmem:[%s2482_s2 + $0xa8] sm:$0xff] %v987_v40  ;;  %v1315_v53 = vmul.f32 %v736_v39, %v736_v39  ;;  %v1970_v38 = vld [vmem:[%s2452_s6 + $0x78] sm:$0xff] }
 0x12c   : > { %v1518_v52 = vadd.f32 %v1517_v26, %v1313_v44  ;;  %v1408_v54 = vadd.f32 %v1407_v28, %v1314_v47  ;;  %1052 = vst [vmem:[%s2482_s2 + $0xb0] sm:$0xff] %v988_v48 }
 0x12d   : > { %v1445_v55 = vadd.f32 %v1444_v29, %v1315_v53 }
 0x12e   : > { %v824_v56 = vpop.f32.mrf.mxu2  ;;  %v913_v59 = vpop.f32.mrf.mxu3 }
 0x12f   : > { %v825_v58 = vadd.f32 %v824_v56, %v2478_v49  ;;  %v649_v60 = vpop.f32.mrf.mxu0  ;;  %v914_v61 = vadd.f32 %v913_v59, %v2480_v50  ;;  %v738_v63 = vpop.f32.mrf.mxu1 }
 0x130   : > { %v650_v62 = vadd.f32 %v649_v60, %v2470_v41  ;;  %v739_v2 = vadd.f32 %v738_v63, %v2472_v42 }
 0x131   : > { %v1184_v0 = vadd.f32 %v1183_v37, %v825_v58  ;;  %v1316_v1 = vmul.f32 %v825_v58, %v825_v58  ;;  %v989_v3 = vpack.c.bf16 %v914_v61, %v825_v58  ;;  %v1221_v4 = vadd.f32 %v1220_v43, %v914_v61  ;;  %688 = vmatmul.bf16.gmra.mxu0 %v1969_v57 }
 0x132   : > { %v1317_v5 = vmul.f32 %v914_v61, %v914_v61  ;;  %v1111_v6 = vadd.f32 %v1110_v45, %v650_v62  ;;  %v1318_v8 = vmul.f32 %v650_v62, %v650_v62  ;;  %v990_v9 = vpack.c.bf16 %v739_v2, %v650_v62  ;;  %777 = vmatmul.bf16.gmra.mxu1 %v1969_v57 }
 0x133   : > { %v1482_v7 = vadd.f32 %v1481_v46, %v1316_v1  ;;  %v1148_v10 = vadd.f32 %v1147_v51, %v739_v2  ;;  %1053 = vst [vmem:[%s2482_s2 + $0xb8] sm:$0xff] %v989_v3  ;;  %v1319_v12 = vmul.f32 %v739_v2, %v739_v2  ;;  %866 = vmatmul.bf16.gmra.mxu2 %v1969_v57 }
 0x134   : > { %v1519_v11 = vadd.f32 %v1518_v52, %v1317_v5  ;;  %955 = vmatmul.bf16.gmra.mxu3 %v1969_v57  ;;  %v1409_v13 = vadd.f32 %v1408_v54, %v1318_v8  ;;  %1054 = vst [vmem:[%s2482_s2 + $0xc0] sm:$0xff] %v990_v9 }
 0x135   : > { %v1446_v14 = vadd.f32 %v1445_v55, %v1319_v12 }
 0x136   : > { %v827_v15 = vpop.f32.mrf.mxu2  ;;  %v916_v17 = vpop.f32.mrf.mxu3 }
 0x137   : > { %v828_v16 = vadd.f32 %v827_v15, %v2478_v49  ;;  %v651_v18 = vpop.f32.mrf.mxu0  ;;  %v917_v19 = vadd.f32 %v916_v17, %v2480_v50  ;;  %v740_v21 = vpop.f32.mrf.mxu1 }
 0x138   : > { %v652_v20 = vadd.f32 %v651_v18, %v2470_v41  ;;  %v741_v24 = vadd.f32 %v740_v21, %v2472_v42 }
 0x139   : > { %v1185_v22 = vadd.f32 %v1184_v0, %v828_v16  ;;  %v1320_v23 = vmul.f32 %v828_v16, %v828_v16  ;;  %v991_v25 = vpack.c.bf16 %v917_v19, %v828_v16  ;;  %v1222_v26 = vadd.f32 %v1221_v4, %v917_v19 }
 0x13a   : > { %v1321_v27 = vmul.f32 %v917_v19, %v917_v19  ;;  %v1112_v28 = vadd.f32 %v1111_v6, %v652_v20  ;;  %v1322_v30 = vmul.f32 %v652_v20, %v652_v20  ;;  %v992_v31 = vpack.c.bf16 %v741_v24, %v652_v20 }
 0x13b   : > { %v1483_v29 = vadd.f32 %v1482_v7, %v1320_v23  ;;  %v1149_v32 = vadd.f32 %v1148_v10, %v741_v24  ;;  %1055 = vst [vmem:[%s2482_s2 + $0xc8] sm:$0xff] %v991_v25  ;;  %v1323_v34 = vmul.f32 %v741_v24, %v741_v24 }
 0x13c   : > { %v1520_v33 = vadd.f32 %v1519_v11, %v1321_v27  ;;  %v1410_v35 = vadd.f32 %v1409_v13, %v1322_v30  ;;  %1056 = vst [vmem:[%s2482_s2 + $0xd0] sm:$0xff] %v992_v31 }
 0x13d   : > { %v1447_v36 = vadd.f32 %v1446_v14, %v1323_v34 }
 0x13e   : > { %v829_v37 = vpop.f32.mrf.mxu2  ;;  %v918_v40 = vpop.f32.mrf.mxu3 }
 0x13f   : > { %v830_v39 = vadd.f32 %v829_v37, %v2478_v49  ;;  %v654_v43 = vpop.f32.mrf.mxu0  ;;  %v919_v44 = vadd.f32 %v918_v40, %v2480_v50  ;;  %v743_v46 = vpop.f32.mrf.mxu1 }
 0x140   : > { %v655_v45 = vadd.f32 %v654_v43, %v2470_v41  ;;  %v744_v51 = vadd.f32 %v743_v46, %v2472_v42 }
 0x141   : > { %v1186_v47 = vadd.f32 %v1185_v22, %v830_v39  ;;  %v1324_v48 = vmul.f32 %v830_v39, %v830_v39  ;;  %v993_v52 = vpack.c.bf16 %v919_v44, %v830_v39  ;;  %v1223_v53 = vadd.f32 %v1222_v26, %v919_v44  ;;  %693 = vmatmul.bf16.gmra.mxu0 %v1970_v38 }
 0x142   : > { %v1325_v54 = vmul.f32 %v919_v44, %v919_v44  ;;  %v1113_v55 = vadd.f32 %v1112_v28, %v655_v45  ;;  %v1326_v57 = vmul.f32 %v655_v45, %v655_v45  ;;  %v994_v58 = vpack.c.bf16 %v744_v51, %v655_v45  ;;  %782 = vmatmul.bf16.gmra.mxu1 %v1970_v38 }
 0x143   : > { %v1484_v56 = vadd.f32 %v1483_v29, %v1324_v48  ;;  %v1150_v59 = vadd.f32 %v1149_v32, %v744_v51  ;;  %1057 = vst [vmem:[%s2482_s2 + $0xd8] sm:$0xff] %v993_v52  ;;  %v1327_v61 = vmul.f32 %v744_v51, %v744_v51  ;;  %871 = vmatmul.bf16.gmra.mxu2 %v1970_v38 }
 0x144   : > { %v1521_v60 = vadd.f32 %v1520_v33, %v1325_v54  ;;  %960 = vmatmul.bf16.gmra.mxu3 %v1970_v38  ;;  %v1411_v62 = vadd.f32 %v1410_v35, %v1326_v57  ;;  %1058 = vst [vmem:[%s2482_s2 + $0xe0] sm:$0xff] %v994_v58 }
 0x145   : > { %v1448_v63 = vadd.f32 %v1447_v36, %v1327_v61 }
 0x146   : > { %v832_v0 = vpop.f32.mrf.mxu2  ;;  %v921_v2 = vpop.f32.mrf.mxu3 }
 0x147   : > { %v833_v1 = vadd.f32 %v832_v0, %v2478_v49  ;;  %v656_v3 = vpop.f32.mrf.mxu0  ;;  %v922_v4 = vadd.f32 %v921_v2, %v2480_v50  ;;  %v745_v6 = vpop.f32.mrf.mxu1 }
 0x148   : > { %v657_v5 = vadd.f32 %v656_v3, %v2470_v41  ;;  %v746_v9 = vadd.f32 %v745_v6, %v2472_v42 }
 0x149   : > { %v1187_v7 = vadd.f32 %v1186_v47, %v833_v1  ;;  %v1328_v8 = vmul.f32 %v833_v1, %v833_v1  ;;  %v995_v10 = vpack.c.bf16 %v922_v4, %v833_v1  ;;  %v1224_v11 = vadd.f32 %v1223_v53, %v922_v4 }
 0x14a   : > { %v1329_v12 = vmul.f32 %v922_v4, %v922_v4  ;;  %v1114_v13 = vadd.f32 %v1113_v55, %v657_v5  ;;  %v1330_v15 = vmul.f32 %v657_v5, %v657_v5  ;;  %v996_v16 = vpack.c.bf16 %v746_v9, %v657_v5 }
 0x14b   : > { %v1485_v14 = vadd.f32 %v1484_v56, %v1328_v8  ;;  %v1151_v17 = vadd.f32 %v1150_v59, %v746_v9  ;;  %1059 = vst [vmem:[%s2482_s2 + $0xe8] sm:$0xff] %v995_v10  ;;  %v1331_v19 = vmul.f32 %v746_v9, %v746_v9 }
 0x14c   : > { %v1522_v18 = vadd.f32 %v1521_v60, %v1329_v12  ;;  %v1412_v20 = vadd.f32 %v1411_v62, %v1330_v15  ;;  %1060 = vst [vmem:[%s2482_s2 + $0xf0] sm:$0xff] %v996_v16 }
 0x14d   : > { %v1449_v21 = vadd.f32 %v1448_v63, %v1331_v19 }
 0x14e   : > { %v834_v22 = vpop.f32.mrf.mxu2  ;;  %v923_v24 = vpop.f32.mrf.mxu3 }
 0x14f   : > { %v835_v23 = vadd.f32 %v834_v22, %v2478_v49  ;;  %v659_v25 = vpop.f32.mrf.mxu0  ;;  %v924_v26 = vadd.f32 %v923_v24, %v2480_v50  ;;  %v748_v28 = vpop.f32.mrf.mxu1 }
 0x150   : > { %v660_v27 = vadd.f32 %v659_v25, %v2470_v41  ;;  %v749_v31 = vadd.f32 %v748_v28, %v2472_v42 }
 0x151   : > { %v1188_v29 = vadd.f32 %v1187_v7, %v835_v23  ;;  %v1332_v30 = vmul.f32 %v835_v23, %v835_v23  ;;  %v997_v32 = vpack.c.bf16 %v924_v26, %v835_v23  ;;  %v1225_v33 = vadd.f32 %v1224_v11, %v924_v26 }
 0x152   : > { %v1333_v34 = vmul.f32 %v924_v26, %v924_v26  ;;  %v1115_v35 = vadd.f32 %v1114_v13, %v660_v27  ;;  %v1334_v37 = vmul.f32 %v660_v27, %v660_v27  ;;  %v998_v38 = vpack.c.bf16 %v749_v31, %v660_v27 }
 0x153   : > { %v1486_v36 = vadd.f32 %v1485_v14, %v1332_v30  ;;  %v1152_v39 = vadd.f32 %v1151_v17, %v749_v31  ;;  %1061 = vst [vmem:[%s2482_s2 + $0xf8] sm:$0xff] %v997_v32  ;;  %v1335_v43 = vmul.f32 %v749_v31, %v749_v31 }
 0x154   : > { %v1523_v40 = vadd.f32 %v1522_v18, %v1333_v34  ;;  %v1413_v44 = vadd.f32 %v1412_v20, %v1334_v37  ;;  %1062 = vst [vmem:[%s2482_s2 + $0x100] sm:$0xff] %v998_v38 }
 0x155   : > { %v1450_v45 = vadd.f32 %v1449_v21, %v1335_v43 }
 0x156   : > { %v837_v46 = vpop.f32.mrf.mxu2  ;;  %v926_v48 = vpop.f32.mrf.mxu3 }
 0x157   : > { %v838_v47 = vadd.f32 %v837_v46, %v2478_v49  ;;  %v661_v51 = vpop.f32.mrf.mxu0  ;;  %v927_v52 = vadd.f32 %v926_v48, %v2480_v50  ;;  %v750_v54 = vpop.f32.mrf.mxu1 }
 0x158   : > { %v662_v53 = vadd.f32 %v661_v51, %v2470_v41  ;;  %v751_v57 = vadd.f32 %v750_v54, %v2472_v42 }
 0x159   : > { %v1189_v55 = vadd.f32 %v1188_v29, %v838_v47  ;;  %v1336_v56 = vmul.f32 %v838_v47, %v838_v47  ;;  %v999_v58 = vpack.c.bf16 %v927_v52, %v838_v47  ;;  %v1226_v59 = vadd.f32 %v1225_v33, %v927_v52 }
 0x15a   : > { %v1337_v60 = vmul.f32 %v927_v52, %v927_v52  ;;  %v1116_v61 = vadd.f32 %v1115_v35, %v662_v53  ;;  %v1338_v63 = vmul.f32 %v662_v53, %v662_v53  ;;  %v1000_v0 = vpack.c.bf16 %v751_v57, %v662_v53 }
 0x15b   : > { %v1487_v62 = vadd.f32 %v1486_v36, %v1336_v56  ;;  %v1153_v1 = vadd.f32 %v1152_v39, %v751_v57  ;;  %1063 = vst [vmem:[%s2482_s2 + $0x108] sm:$0xff] %v999_v58  ;;  %v1339_v3 = vmul.f32 %v751_v57, %v751_v57 }
 0x15c   : > { %v1524_v2 = vadd.f32 %v1523_v40, %v1337_v60  ;;  %v1414_v4 = vadd.f32 %v1413_v44, %v1338_v63  ;;  %1064 = vst [vmem:[%s2482_s2 + $0x110] sm:$0xff] %v1000_v0 }
 0x15d   : > { %v1451_v5 = vadd.f32 %v1450_v45, %v1339_v3 }
 0x15e   : > { %v839_v6 = vpop.f32.mrf.mxu2  ;;  %v928_v8 = vpop.f32.mrf.mxu3 }
 0x15f   : > { %v840_v7 = vadd.f32 %v839_v6, %v2478_v49  ;;  %v664_v9 = vpop.f32.mrf.mxu0  ;;  %v929_v10 = vadd.f32 %v928_v8, %v2480_v50  ;;  %v753_v12 = vpop.f32.mrf.mxu1 }
 0x160   : > { %v665_v11 = vadd.f32 %v664_v9, %v2470_v41  ;;  %v754_v15 = vadd.f32 %v753_v12, %v2472_v42 }
 0x161   : > { %v1190_v13 = vadd.f32 %v1189_v55, %v840_v7  ;;  %v1340_v14 = vmul.f32 %v840_v7, %v840_v7  ;;  %v1001_v16 = vpack.c.bf16 %v929_v10, %v840_v7  ;;  %v1227_v17 = vadd.f32 %v1226_v59, %v929_v10 }
 0x162   : > { %v1341_v18 = vmul.f32 %v929_v10, %v929_v10  ;;  %v1117_v19 = vadd.f32 %v1116_v61, %v665_v11  ;;  %v1342_v21 = vmul.f32 %v665_v11, %v665_v11  ;;  %v1002_v22 = vpack.c.bf16 %v754_v15, %v665_v11 }
 0x163   : > { %v1488_v20 = vadd.f32 %v1487_v62, %v1340_v14  ;;  %v1154_v23 = vadd.f32 %v1153_v1, %v754_v15  ;;  %1065 = vst [vmem:[%s2482_s2 + $0x118] sm:$0xff] %v1001_v16  ;;  %v1343_v25 = vmul.f32 %v754_v15, %v754_v15 }
 0x164   : > { %v1525_v24 = vadd.f32 %v1524_v2, %v1341_v18  ;;  %v1415_v26 = vadd.f32 %v1414_v4, %v1342_v21  ;;  %1066 = vst [vmem:[%s2482_s2 + $0x120] sm:$0xff] %v1002_v22 }
 0x165   : > { %v1452_v27 = vadd.f32 %v1451_v5, %v1343_v25 }
 0x166   : > { %v842_v28 = vpop.f32.mrf.mxu2 }
 0x167   : > { %v931_v29 = vpop.f32.mrf.mxu3  ;;  %v843_v30 = vadd.f32 %v842_v28, %v2478_v49  ;;  %v666_v32 = vpop.f32.mrf.mxu0 }
 0x168   : > { %v932_v31 = vadd.f32 %v931_v29, %v2480_v50  ;;  %v755_v33 = vpop.f32.mrf.mxu1  ;;  %v667_v34 = vadd.f32 %v666_v32, %v2470_v41 }
 0x169   : > { %v756_v35 = vadd.f32 %v755_v33, %v2472_v42  ;;  %v1191_v36 = vadd.f32 %v1190_v13, %v843_v30  ;;  %v1344_v37 = vmul.f32 %v843_v30, %v843_v30 }
 0x16a   : > { %v1003_v38 = vpack.c.bf16 %v932_v31, %v843_v30  ;;  %v1228_v39 = vadd.f32 %v1227_v17, %v932_v31  ;;  %v1345_v40 = vmul.f32 %v932_v31, %v932_v31  ;;  %v1118_v43 = vadd.f32 %v1117_v19, %v667_v34 }
 0x16b   : > { %v1346_v44 = vmul.f32 %v667_v34, %v667_v34  ;;  %v1004_v45 = vpack.c.bf16 %v756_v35, %v667_v34  ;;  %v1489_v46 = vadd.f32 %v1488_v20, %v1344_v37  ;;  %v1155_v47 = vadd.f32 %v1154_v23, %v756_v35 }
 0x16c   : > { %1067 = vst [vmem:[%s2482_s2 + $0x128] sm:$0xff] %v1003_v38  ;;  %v1347_v48 = vmul.f32 %v756_v35, %v756_v35  ;;  %v1526_v51 = vadd.f32 %v1525_v24, %v1345_v40 }
 0x16d   : > { %v1416_v52 = vadd.f32 %v1415_v26, %v1346_v44  ;;  %1068 = vst [vmem:[%s2482_s2 + $0x130] sm:$0xff] %v1004_v45 }
 0x16e   : > { %v1453_v53 = vadd.f32 %v1452_v27, %v1347_v48  ;;  %v844_v54 = vpop.f32.mrf.mxu2 }
 0x16f   : > { %v933_v55 = vpop.f32.mrf.mxu3  ;;  %v845_v56 = vadd.f32 %v844_v54, %v2478_v49  ;;  %v669_v58 = vpop.f32.mrf.mxu0 }
 0x170   : > { %v934_v57 = vadd.f32 %v933_v55, %v2480_v50  ;;  %v758_v59 = vpop.f32.mrf.mxu1  ;;  %v670_v60 = vadd.f32 %v669_v58, %v2470_v41 }
 0x171   : > { %v759_v61 = vadd.f32 %v758_v59, %v2472_v42  ;;  %v1192_v62 = vadd.f32 %v1191_v36, %v845_v56  ;;  %v1348_v63 = vmul.f32 %v845_v56, %v845_v56 }
 0x172   : > { %v1005_v0 = vpack.c.bf16 %v934_v57, %v845_v56  ;;  %v1229_v1 = vadd.f32 %v1228_v39, %v934_v57  ;;  %v1349_v2 = vmul.f32 %v934_v57, %v934_v57  ;;  %v1119_v3 = vadd.f32 %v1118_v43, %v670_v60 }
 0x173   : > { %v1350_v4 = vmul.f32 %v670_v60, %v670_v60  ;;  %v1006_v5 = vpack.c.bf16 %v759_v61, %v670_v60  ;;  %v1490_v6 = vadd.f32 %v1489_v46, %v1348_v63  ;;  %v1156_v7 = vadd.f32 %v1155_v47, %v759_v61 }
 0x174   : > { %1069 = vst [vmem:[%s2482_s2 + $0x138] sm:$0xff] %v1005_v0  ;;  %v1351_v8 = vmul.f32 %v759_v61, %v759_v61  ;;  %v1527_v9 = vadd.f32 %v1526_v51, %v1349_v2 }
 0x175   : > { %v1417_v10 = vadd.f32 %v1416_v52, %v1350_v4  ;;  %1070 = vst [vmem:[%s2482_s2 + $0x140] sm:$0xff] %v1006_v5 }
 0x176   : > { %v1454_v11 = vadd.f32 %v1453_v53, %v1351_v8  ;;  %v847_v12 = vpop.f32.mrf.mxu2 }
 0x177   : > { %v936_v13 = vpop.f32.mrf.mxu3  ;;  %v848_v14 = vadd.f32 %v847_v12, %v2478_v49  ;;  %v671_v16 = vpop.f32.mrf.mxu0 }
 0x178   : > { %v937_v15 = vadd.f32 %v936_v13, %v2480_v50  ;;  %v760_v17 = vpop.f32.mrf.mxu1  ;;  %v672_v18 = vadd.f32 %v671_v16, %v2470_v41 }
 0x179   : > { %v761_v19 = vadd.f32 %v760_v17, %v2472_v42  ;;  %v2616_v20 = vadd.f32 %v1192_v62, %v848_v14  ;;  %v1352_v21 = vmul.f32 %v848_v14, %v848_v14 }
 0x17a   : > { %v1007_v22 = vpack.c.bf16 %v937_v15, %v848_v14  ;;  %v2618_v23 = vadd.f32 %v1229_v1, %v937_v15  ;;  %v1353_v24 = vmul.f32 %v937_v15, %v937_v15  ;;  %v1120_v25 = vadd.f32 %v1119_v3, %v672_v18 }
 0x17b   : > { %v1354_v26 = vmul.f32 %v672_v18, %v672_v18  ;;  %v1008_v27 = vpack.c.bf16 %v761_v19, %v672_v18  ;;  %v1491_v28 = vadd.f32 %v1490_v6, %v1352_v21  ;;  %v2621_v29 = vadd.f32 %v1156_v7, %v761_v19 }
 0x17c   : > { %1071 = vst [vmem:[%s2482_s2 + $0x148] sm:$0xff] %v1007_v22  ;;  %v1355_v30 = vmul.f32 %v761_v19, %v761_v19  ;;  %v1528_v31 = vadd.f32 %v1527_v9, %v1353_v24 }
 0x17d   : > { %v1418_v32 = vadd.f32 %v1417_v10, %v1354_v26  ;;  %1072 = vst [vmem:[%s2482_s2 + $0x150] sm:$0xff] %v1008_v27 }
 0x17e   : > { %v1455_v33 = vadd.f32 %v1454_v11, %v1355_v30  ;;  %v849_v34 = vpop.f32.mrf.mxu2 }
 0x17f   : > { %v938_v35 = vpop.f32.mrf.mxu3  ;;  %v2625_v36 = vadd.f32 %v849_v34, %v2478_v49  ;;  %v674_v38 = vpop.f32.mrf.mxu0 }
 0x180   : > { %v2628_v37 = vadd.f32 %v938_v35, %v2480_v50  ;;  %v763_v39 = vpop.f32.mrf.mxu1  ;;  %v675_v40 = vadd.f32 %v674_v38, %v2470_v41 }
 0x181   : > { %v2632_v43 = vadd.f32 %v763_v39, %v2472_v42  ;;  %v1356_v44 = vmul.f32 %v2625_v36, %v2625_v36 }
 0x182   : > { %v1009_v45 = vpack.c.bf16 %v2628_v37, %v2625_v36  ;;  %v1357_v46 = vmul.f32 %v2628_v37, %v2628_v37  ;;  %v2640_v47 = vadd.f32 %v1120_v25, %v675_v40  ;;  %v1358_v48 = vmul.f32 %v675_v40, %v675_v40 }
 0x183   : > { %v1010_v51 = vpack.c.bf16 %v2632_v43, %v675_v40  ;;  %v2643_v52 = vadd.f32 %v1491_v28, %v1356_v44  ;;  %v1359_v53 = vmul.f32 %v2632_v43, %v2632_v43 }
 0x184   : > { %1073 = vst [vmem:[%s2482_s2 + $0x158] sm:$0xff] %v1009_v45  ;;  %v2648_v54 = vadd.f32 %v1528_v31, %v1357_v46  ;;  %v2650_v55 = vadd.f32 %v1418_v32, %v1358_v48 }
 0x185   : > { %1074 = vst [vmem:[%s2482_s2 + $0x160] sm:$0xff] %v1010_v51  ;;  %v2653_v56 = vadd.f32 %v1455_v33, %v1359_v53 }
 0x186   : > { %v852_v57 = vpop.f32.mrf.mxu2 }
 0x187   : > { %v941_v58 = vpop.f32.mrf.mxu3  ;;  %v853_v59 = vadd.f32 %v852_v57, %v2478_v49  ;;  %v676_v61 = vpop.f32.mrf.mxu0 }
 0x188   : > { %v2657_v60 = vadd.f32 %v941_v58, %v2480_v50  ;;  %v765_v62 = vpop.f32.mrf.mxu1  ;;  %v677_v63 = vadd.f32 %v676_v61, %v2470_v41  ;;  %v1194_v58 = vadd.f32 %v2616_v20, %v2625_v36  ;;  %v1231_v61 = vadd.f32 %v2618_v23, %v2628_v37 }
 0x189   : > { %v2661_v0 = vadd.f32 %v765_v62, %v2472_v42  ;;  %v1158_v62 = vadd.f32 %v2621_v29, %v2632_v43 }
 0x18a   : > { %v1011_v1 = vpack.c.bf16 %v2657_v60, %v853_v59 }
 0x18b   : > { %v1012_v2 = vpack.c.bf16 %v2661_v0, %v677_v63  ;;  %v1363_v20 = vmul.f32 %v2661_v0, %v2661_v0 }
 0x18c   : > { %1075 = vst [vmem:[%s2482_s2 + $0x168] sm:$0xff] %v1011_v1  ;;  %v1195_v1 = vadd.f32 %v1194_v58, %v853_v59 }
 0x18d   : > { %1076 = vst [vmem:[%s2482_s2 + $0x170] sm:$0xff] %v1012_v2  ;;  %v1360_v2 = vmul.f32 %v853_v59, %v853_v59 }
 0x18e   : > { %v854_v3 = vpop.f32.mrf.mxu2 }
 0x18f   : > { %v943_v4 = vpop.f32.mrf.mxu3  ;;  %v2668_v5 = vadd.f32 %v854_v3, %v2478_v49  ;;  %v679_v7 = vpop.f32.mrf.mxu0  ;;  %v1361_v3 = vmul.f32 %v2657_v60, %v2657_v60 }
 0x190   : > { %v2671_v6 = vadd.f32 %v943_v4, %v2480_v50  ;;  %v768_v8 = vpop.f32.mrf.mxu1  ;;  %v2674_v9 = vadd.f32 %v679_v7, %v2470_v41  ;;  %v1232_v4 = vadd.f32 %v1231_v61, %v2657_v60  ;;  %v1122_v7 = vadd.f32 %v2640_v47, %v677_v63 }
 0x191   : > { %v2677_v10 = vadd.f32 %v768_v8, %v2472_v42  ;;  %v1362_v8 = vmul.f32 %v677_v63, %v677_v63  ;;  %v1364_v23 = vmul.f32 %v2668_v5, %v2668_v5 }
 0x192   : > { %v1013_v11 = vpack.c.bf16 %v2671_v6, %v2668_v5  ;;  %v1365_v29 = vmul.f32 %v2671_v6, %v2671_v6  ;;  %v1366_v60 = vmul.f32 %v2674_v9, %v2674_v9 }
 0x193   : > { %v1014_v12 = vpack.c.bf16 %v2677_v10, %v2674_v9  ;;  %v1367_v63 = vmul.f32 %v2677_v10, %v2677_v10 }
 0x194   : > { %1077 = vst [vmem:[%s2482_s2 + $0x178] sm:$0xff] %v1013_v11 }
 0x195   : > { %1078 = vst [vmem:[%s2482_s2 + $0x180] sm:$0xff] %v1014_v12 }
 0x196   : > { %v857_v13 = vpop.f32.mrf.mxu2 }
 0x197   : > { %v946_v14 = vpop.f32.mrf.mxu3  ;;  %v2686_v15 = vadd.f32 %v857_v13, %v2478_v49  ;;  %v681_v17 = vpop.f32.mrf.mxu0 }
 0x198   : > { %v2689_v16 = vadd.f32 %v946_v14, %v2480_v50  ;;  %v770_v18 = vpop.f32.mrf.mxu1  ;;  %v2692_v19 = vadd.f32 %v681_v17, %v2470_v41  ;;  %v1493_v14 = vadd.f32 %v2643_v52, %v1360_v2  ;;  %v1530_v17 = vadd.f32 %v2648_v54, %v1361_v3 }
 0x199   : > { %v2695_v21 = vadd.f32 %v770_v18, %v2472_v42  ;;  %v1159_v18 = vadd.f32 %v1158_v62, %v2661_v0  ;;  %v1196_v52 = vadd.f32 %v1195_v1, %v2668_v5  ;;  %v1233_v54 = vadd.f32 %v1232_v4, %v2671_v6 }
 0x19a   : > { %v1015_v22 = vpack.c.bf16 %v2689_v16, %v2686_v15  ;;  %v1123_v0 = vadd.f32 %v1122_v7, %v2674_v9  ;;  %v1370_v5 = vmul.f32 %v2692_v19, %v2692_v19 }
 0x19b   : > { %v1016_v24 = vpack.c.bf16 %v2695_v21, %v2692_v19  ;;  %v1371_v6 = vmul.f32 %v2695_v21, %v2695_v21  ;;  %v1234_v9 = vadd.f32 %v1233_v54, %v2689_v16 }
 0x19c   : > { %1079 = vst [vmem:[%s2482_s2 + $0x188] sm:$0xff] %v1015_v22 }
 0x19d   : > { %1080 = vst [vmem:[%s2482_s2 + $0x190] sm:$0xff] %v1016_v24  ;;  %v1420_v24 = vadd.f32 %v2650_v55, %v1362_v8  ;;  %v1160_v55 = vadd.f32 %v1159_v18, %v2677_v10 }
 0x19e   : > { %v859_v25 = vpop.f32.mrf.mxu2 }
 0x19f   : > { %v948_v26 = vpop.f32.mrf.mxu3  ;;  %v2704_v27 = vadd.f32 %v859_v25, %v2478_v49  ;;  %v684_v30 = vpop.f32.mrf.mxu0  ;;  %v1457_v25 = vadd.f32 %v2653_v56, %v1363_v20  ;;  %v1197_v56 = vadd.f32 %v1196_v52, %v2686_v15  ;;  %v1161_v10 = vadd.f32 %v1160_v55, %v2695_v21 }
 0x1a0   : > { %v2707_v28 = vadd.f32 %v948_v26, %v2480_v50  ;;  %v773_v31 = vpop.f32.mrf.mxu1  ;;  %v2710_v32 = vadd.f32 %v684_v30, %v2470_v41  ;;  %v1368_v26 = vmul.f32 %v2686_v15, %v2686_v15 }
 0x1a1   : > { %v2713_v33 = vadd.f32 %v773_v31, %v2472_v42  ;;  %v1494_v31 = vadd.f32 %v1493_v14, %v1364_v23  ;;  %v1372_v15 = vmul.f32 %v2704_v27, %v2704_v27 }
 0x1a2   : > { %v1017_v34 = vpack.c.bf16 %v2707_v28, %v2704_v27  ;;  %v1373_v58 = vmul.f32 %v2707_v28, %v2707_v28 }
 0x1a3   : > { %v1018_v35 = vpack.c.bf16 %v2713_v33, %v2710_v32  ;;  %v1375_v21 = vmul.f32 %v2713_v33, %v2713_v33 }
 0x1a4   : > { %1081 = vst [vmem:[%s2482_s2 + $0x198] sm:$0xff] %v1017_v34  ;;  %v1531_v34 = vadd.f32 %v1530_v17, %v1365_v29 }
 0x1a5   : > { %1082 = vst [vmem:[%s2482_s2 + $0x1a0] sm:$0xff] %v1018_v35  ;;  %v1421_v35 = vadd.f32 %v1420_v24, %v1366_v60 }
 0x1a6   : > { %v862_v38 = vpop.f32.mrf.mxu2 }
 0x1a7   : > { %v951_v39 = vpop.f32.mrf.mxu3  ;;  %v2722_v40 = vadd.f32 %v862_v38, %v2478_v49  ;;  %v686_v45 = vpop.f32.mrf.mxu0  ;;  %v1458_v38 = vadd.f32 %v1457_v25, %v1367_v63  ;;  %v1422_v7 = vadd.f32 %v1421_v35, %v1370_v5  ;;  %v1162_v63 = vadd.f32 %v1161_v10, %v2713_v33 }
 0x1a8   : > { %v2725_v44 = vadd.f32 %v951_v39, %v2480_v50  ;;  %v775_v46 = vpop.f32.mrf.mxu1  ;;  %v2728_v48 = vadd.f32 %v686_v45, %v2470_v41  ;;  %v1369_v39 = vmul.f32 %v2689_v16, %v2689_v16  ;;  %v1495_v45 = vadd.f32 %v1494_v31, %v1368_v26 }
 0x1a9   : > { %v2731_v51 = vadd.f32 %v775_v46, %v2472_v42  ;;  %v1124_v46 = vadd.f32 %v1123_v0, %v2692_v19  ;;  %v1374_v19 = vmul.f32 %v2710_v32, %v2710_v32  ;;  %v1459_v8 = vadd.f32 %v1458_v38, %v1371_v6 }
 0x1aa   : > { %v1019_v53 = vpack.c.bf16 %v2725_v44, %v2722_v40  ;;  %v1532_v4 = vadd.f32 %v1531_v34, %v1369_v39  ;;  %v1377_v23 = vmul.f32 %v2725_v44, %v2725_v44  ;;  %v1378_v24 = vmul.f32 %v2728_v48, %v2728_v48 }
 0x1ab   : > { %v1020_v57 = vpack.c.bf16 %v2731_v51, %v2728_v48  ;;  %v1125_v60 = vadd.f32 %v1124_v46, %v2710_v32  ;;  %v1423_v17 = vadd.f32 %v1422_v7, %v1374_v19  ;;  %v1379_v25 = vmul.f32 %v2731_v51, %v2731_v51 }
 0x1ac   : > { %1083 = vst [vmem:[%s2482_s2 + $0x1a8] sm:$0xff] %v1019_v53  ;;  %v1533_v14 = vadd.f32 %v1532_v4, %v1373_v58  ;;  %v1163_v33 = vadd.f32 %v1162_v63, %v2731_v51 }
 0x1ad   : > { %1084 = vst [vmem:[%s2482_s2 + $0x1b0] sm:$0xff] %v1020_v57  ;;  %v1126_v32 = vadd.f32 %v1125_v60, %v2728_v48 }
 0x1ae   : > { %v864_v36 = vpop.f32.mrf.mxu2  ;;  %v1534_v26 = vadd.f32 %v1533_v14, %v1377_v23 }
 0x1af   : > { %v953_v11 = vpop.f32.mrf.mxu3  ;;  %v2756_v37 = vadd.f32 %v864_v36, %v2478_v49  ;;  %v689_v59 = vpop.f32.mrf.mxu0  ;;  %v1198_v36 = vadd.f32 %v1197_v56, %v2704_v27  ;;  %v1460_v27 = vadd.f32 %v1459_v8, %v1375_v21  ;;  %v1424_v56 = vadd.f32 %v1423_v17, %v1378_v24 }
 0x1b0   : > { %v2759_v43 = vadd.f32 %v953_v11, %v2480_v50  ;;  %v778_v47 = vpop.f32.mrf.mxu1  ;;  %v2766_v12 = vadd.f32 %v689_v59, %v2470_v41  ;;  %v1376_v11 = vmul.f32 %v2722_v40, %v2722_v40  ;;  %v1496_v59 = vadd.f32 %v1495_v45, %v1372_v15 }
 0x1b1   : > { %v2769_v13 = vadd.f32 %v778_v47, %v2472_v42  ;;  %v1235_v47 = vadd.f32 %v1234_v9, %v2707_v28  ;;  %v1199_v18 = vadd.f32 %v1198_v36, %v2722_v40  ;;  %v2316_v40 = vmov 0.0  }
 0x1b2   : > { %v1021_v22 = vpack.c.bf16 %v2759_v43, %v2756_v37  ;;  %v1497_v28 = vadd.f32 %v1496_v59, %v1376_v11  ;;  %1098 = vst [vmem:[%s2841_s25] sm:$0xff] %v2316_v40  ;;  %v1381_v31 = vmul.f32 %v2759_v43, %v2759_v43  ;;  %v1382_v51 = vmul.f32 %v2766_v12, %v2766_v12 }
 0x1b3   : > { %v1022_v30 = vpack.c.bf16 %v2769_v13, %v2766_v12  ;;  %v1383_v35 = vmul.f32 %v2769_v13, %v2769_v13  ;;  %v1461_v39 = vadd.f32 %v1460_v27, %v1379_v25  ;;  %v1200_v45 = vadd.f32 %v1199_v18, %v2756_v37 }
 0x1b4   : > { %1085 = vst [vmem:[%s2482_s2 + $0x1b8] sm:$0xff] %v1021_v22  ;;  %v1236_v22 = vadd.f32 %v1235_v47, %v2725_v44  ;;  %v1380_v44 = vmul.f32 %v2756_v37, %v2756_v37  ;;  %v1127_v15 = vadd.f32 %v1126_v32, %v2766_v12  ;;  %v1164_v37 = vadd.f32 %v1163_v33, %v2769_v13 }
 0x1b5   : > { %1086 = vst [vmem:[%s2482_s2 + $0x1c0] sm:$0xff] %v1022_v30  ;;  %v1462_v19 = vadd.f32 %v1461_v39, %v1383_v35 }
 0x1b6   : > { %v867_v53 = vpop.f32.mrf.mxu2 }
 0x1b7   : > { %v956_v57 = vpop.f32.mrf.mxu3  ;;  %v2803_v61 = vadd.f32 %v867_v53, %v2478_v49  ;;  %v691_v1 = vpop.f32.mrf.mxu0  ;;  %v1498_v53 = vadd.f32 %v1497_v28, %v1380_v44 }
 0x1b8   : > { %v2806_v62 = vadd.f32 %v956_v57, %v2480_v50  ;;  %v780_v16 = vpop.f32.mrf.mxu1  ;;  %v2813_v2 = vadd.f32 %v691_v1, %v2470_v41  ;;  %v1237_v57 = vadd.f32 %v1236_v22, %v2759_v43  ;;  %v1535_v1 = vadd.f32 %v1534_v26, %v1381_v31 }
 0x1b9   : > { %v2816_v3 = vadd.f32 %v780_v16, %v2472_v42  ;;  %v1384_v5 = vmul.f32 %v2803_v61, %v2803_v61  ;;  %v1425_v16 = vadd.f32 %v1424_v56, %v1382_v51  ;;  %v1201_v21 = vadd.f32 %v1200_v45, %v2803_v61 }
 0x1ba   : > { %v1023_v20 = vpack.c.bf16 %v2806_v62, %v2803_v61  ;;  %v1385_v9 = vmul.f32 %v2806_v62, %v2806_v62  ;;  %v1386_v46 = vmul.f32 %v2813_v2, %v2813_v2  ;;  %v1238_v7 = vadd.f32 %v1237_v57, %v2806_v62 }
 0x1bb   : > { %v1024_v29 = vpack.c.bf16 %v2816_v3, %v2813_v2  ;;  %v1387_v58 = vmul.f32 %v2816_v3, %v2816_v3  ;;  %v1499_v4 = vadd.f32 %v1498_v53, %v1384_v5  ;;  %v1128_v8 = vadd.f32 %v1127_v15, %v2813_v2 }
 0x1bc   : > { %1087 = vst [vmem:[%s2482_s2 + $0x1c8] sm:$0xff] %v1023_v20  ;;  %v1536_v43 = vadd.f32 %v1535_v1, %v1385_v9  ;;  %v1426_v12 = vadd.f32 %v1425_v16, %v1386_v46  ;;  %v1165_v20 = vadd.f32 %v1164_v37, %v2816_v3 }
 0x1bd   : > { %1088 = vst [vmem:[%s2482_s2 + $0x1d0] sm:$0xff] %v1024_v29  ;;  %v1463_v29 = vadd.f32 %v1462_v19, %v1387_v58 }
 0x1be   : > { %v869_v30 = vpop.f32.mrf.mxu2 }
 0x1bf   : > { %v958_v52 = vpop.f32.mrf.mxu3  ;;  %v870_v54 = vadd.f32 %v869_v30, %v2478_v49  ;;  %v694_v48 = vpop.f32.mrf.mxu0 }
 0x1c0   : > { %v959_v0 = vadd.f32 %v958_v52, %v2480_v50  ;;  %v783_v34 = vpop.f32.mrf.mxu1  ;;  %v695_v55 = vadd.f32 %v694_v48, %v2470_v41 }
 0x1c1   : > { %v784_v38 = vadd.f32 %v783_v34, %v2472_v42  ;;  %v1202_v62 = vadd.f32 %v1201_v21, %v870_v54  ;;  %v1388_v3 = vmul.f32 %v870_v54, %v870_v54 }
 0x1c2   : > { %v1025_v6 = vpack.c.bf16 %v959_v0, %v870_v54  ;;  %v1390_v36 = vmul.f32 %v695_v55, %v695_v55  ;;  %v1129_v63 = vadd.f32 %v1128_v8, %v695_v55  ;;  %v1389_v17 = vmul.f32 %v959_v0, %v959_v0 }
 0x1c3   : > { %v1026_v10 = vpack.c.bf16 %v784_v38, %v695_v55  ;;  %v1391_v59 = vmul.f32 %v784_v38, %v784_v38  ;;  %v1166_v27 = vadd.f32 %v1165_v20, %v784_v38  ;;  %v1239_v26 = vadd.f32 %v1238_v7, %v959_v0 }
 0x1c4   : > { %1089 = vst [vmem:[%s2482_s2 + $0x1d8] sm:$0xff] %v1025_v6  ;;  %v1427_v22 = vadd.f32 %v1426_v12, %v1390_v36  ;;  %v1500_v44 = vadd.f32 %v1499_v4, %v1388_v3  ;;  %v1537_v31 = vadd.f32 %v1536_v43, %v1389_v17 }
 0x1c5   : > { %1090 = vst [vmem:[%s2482_s2 + $0x1e0] sm:$0xff] %v1026_v10  ;;  %v1464_v32 = vadd.f32 %v1463_v29, %v1391_v59 }
 0x1c6   : > { %v872_v11 = vpop.f32.mrf.mxu2 }
 0x1c7   : > { %v961_v23 = vpop.f32.mrf.mxu3  ;;  %v873_v13 = vadd.f32 %v872_v11, %v2478_v49  ;;  %v696_v61 = vpop.f32.mrf.mxu0 }
 0x1c8   : > { %v962_v47 = vadd.f32 %v961_v23, %v2480_v50  ;;  %v785_v60 = vpop.f32.mrf.mxu1  ;;  %v697_v2 = vadd.f32 %v696_v61, %v2470_v41 }
 0x1c9   : > { %v786_v14 = vadd.f32 %v785_v60, %v2472_v42  ;;  %v1392_v41 = vmul.f32 %v873_v13, %v873_v13  ;;  %v1203_v48 = vadd.f32 %v1202_v62, %v873_v13 }
 0x1ca   : > { %v1027_v18 = vpack.c.bf16 %v962_v47, %v873_v13  ;;  %v1130_v24 = vadd.f32 %v1129_v63, %v697_v2  ;;  %v1394_v25 = vmul.f32 %v697_v2, %v697_v2  ;;  %v1393_v42 = vmul.f32 %v962_v47, %v962_v47 }
 0x1cb   : > { %v1028_v28 = vpack.c.bf16 %v786_v14, %v697_v2  ;;  %v1167_v33 = vadd.f32 %v1166_v27, %v786_v14  ;;  %v1395_v30 = vmul.f32 %v786_v14, %v786_v14  ;;  %v1240_v34 = vadd.f32 %v1239_v26, %v962_v47 }
 0x1cc   : > { %1091 = vst [vmem:[%s2482_s2 + $0x1e8] sm:$0xff] %v1027_v18  ;;  %v1131_v52 = vrot.slane %v1130_v24, 4  ;;  %v1428_v40 = vadd.f32 %v1427_v22, %v1394_v25  ;;  %v1501_v45 = vadd.f32 %v1500_v44, %v1392_v41  ;;  %v1538_v9 = vadd.f32 %v1537_v31, %v1393_v42 }
 0x1cd   : > { %1092 = vst [vmem:[%s2482_s2 + $0x1f0] sm:$0xff] %v1028_v28  ;;  %v1168_v54 = vrot.slane %v1167_v33, 4  ;;  %v1465_v0 = vadd.f32 %v1464_v32, %v1395_v30 }
 0x1ce   : > { %v1132_v51 = vadd.f32 %v1131_v52, %v1130_v24  ;;  %v1429_v35 = vrot.slane %v1428_v40, 4  ;;  %v874_v55 = vpop.f32.mrf.mxu2 }
 0x1cf   : > { %v963_v38 = vpop.f32.mrf.mxu3  ;;  %v1169_v56 = vadd.f32 %v1168_v54, %v1167_v33  ;;  %v1466_v39 = vrot.slane %v1465_v0, 4  ;;  %v875_v5 = vadd.f32 %v874_v55, %v2478_v49 }
 0x1d0   : > { %v964_v6 = vadd.f32 %v963_v38, %v2480_v50  ;;  %v1133_v46 = vrot.slane %v1132_v51, 2  ;;  %v1430_v10 = vadd.f32 %v1429_v35, %v1428_v40 }
 0x1d1   : > { %v1170_v53 = vrot.slane %v1169_v56, 2  ;;  %v1467_v57 = vadd.f32 %v1466_v39, %v1465_v0  ;;  %v1204_v15 = vadd.f32 %v1203_v48, %v875_v5  ;;  %v1396_v58 = vmul.f32 %v875_v5, %v875_v5 }
 0x1d2   : > { %v1134_v1 = vadd.f32 %v1133_v46, %v1132_v51  ;;  %v1431_v16 = vrot.slane %v1430_v10, 2  ;;  %v1029_v37 = vpack.c.bf16 %v964_v6, %v875_v5  ;;  %v1241_v49 = vadd.f32 %v1240_v34, %v964_v6 }
 0x1d3   : > { %v1171_v50 = vadd.f32 %v1170_v53, %v1169_v56  ;;  %v1468_v19 = vrot.slane %v1467_v57, 2  ;;  %v1205_v21 = vrot.slane %v1204_v15, 4  ;;  %v1502_v4 = vadd.f32 %v1501_v45, %v1396_v58 }
 0x1d4   : > { %v1135_v7 = vrot.slane %v1134_v1, 1  ;;  %v1432_v8 = vadd.f32 %v1431_v16, %v1430_v10  ;;  %1093 = vst [vmem:[%s2482_s2 + $0x1f8] sm:$0xff] %v1029_v37  ;;  %v1242_v43 = vrot.slane %v1241_v49, 4  ;;  %v1397_v12 = vmul.f32 %v964_v6, %v964_v6 }
 0x1d5   : > { %v1172_v20 = vrot.slane %v1171_v50, 1  ;;  %v1469_v36 = vadd.f32 %v1468_v19, %v1467_v57  ;;  %v1206_v11 = vadd.f32 %v1205_v21, %v1204_v15  ;;  %v1503_v23 = vrot.slane %v1502_v4, 4 }
 0x1d6   : > { %2217 = shalt.err (!%p2214_p0)
}
 0x1d7   : > { %s2317_s2 = smov 256   ;;  %s2318_s23 = smov 16   ;;  %v1433_v29 = vrot.slane %v1432_v8, 1  ;;  %v1243_v59 = vadd.f32 %v1242_v43, %v1241_v49  ;;  %v1539_v13 = vadd.f32 %v1538_v9, %v1397_v12  ;;  %v1173_v47 = vadd.f32 %v1172_v20, %v1171_v50  ;;  %v1099_v35 = vld [vmem:[%s2841_s25] ss:$2 sm:$0xf] }
 0x1d8   : > { %2015 = dma.vmem_to_hbm [thread:$0]  (%p2427_p7), %s2890_s9, 8192, %s2892_s10, %s1560_s11, %s2317_s2, %s2317_s2, %s2318_s23   ;;  %v1470_v61 = vrot.slane %v1469_v36, 1  ;;  %v1207_v60 = vrot.slane %v1206_v11, 2  ;;  %v1504_v62 = vadd.f32 %v1503_v23, %v1502_v4  ;;  %v1136_v63 = vadd.f32 %v1135_v7, %v1134_v1 }
 0x1d9   : > { %vm1255_vm0 = vcmask 1040384   ;;  %v1244_v2 = vrot.slane %v1243_v59, 2  ;;  %v1540_v14 = vrot.slane %v1539_v13, 4  ;;  %v1252_v3 = vrot.slane %v1173_v47, 7  ;;  %s2004_s30 = sshll.u32 %s2300_s18, 3  ;;  %s1598_s18 = sshll.u32 %s2841_s25, 4  ;;  %s1599_s18 = int_to_ptr.vmem [resolvable:$true] %s1598_s18 }
 0x1da   : > { %v1471_v17 = vadd.f32 %v1470_v61, %v1469_v36  ;;  %v1208_v27 = vadd.f32 %v1207_v60, %v1206_v11  ;;  %v1505_v18 = vrot.slane %v1504_v62, 2  ;;  %v1434_v22 = vadd.f32 %v1433_v29, %v1432_v8  ;;  %s1596_s8 = scalar_lea.hbm %s2962_s4, %s2004_s30  ;;  %v1944_v45 = vld [vmem:[%s2841_s25 + $0x1] ss:$2 sm:$0xf]  ;;  %s1565_s10 = scalar_lea.sflag [#allocation10], %s2448_s21 }
 0x1db   : > { %v1245_v24 = vadd.f32 %v1244_v2, %v1243_v59  ;;  %v1541_v25 = vadd.f32 %v1540_v14, %v1539_v13  ;;  %v1256_v28 = vsel %vm1255_vm0, %v1136_v63, %v1252_v3  ;;  %vm1257_vm1 = vcmask 1042434   ;;  %s1600_s9 = sshll.u32 %s1596_s8, 4  ;;  %s2238_s28 = scalar_lea.hbm %s2962_s4, 16  ;;  %s1601_s9 = int_to_ptr.hbm [resolvable:$true] %s1600_s9 }
 0x1dc   : > { %v1550_v26 = vrot.slane %v1471_v17, 7  ;;  %v1209_v32 = vrot.slane %v1208_v27, 1  ;;  %v1506_v33 = vadd.f32 %v1505_v18, %v1504_v62  ;;  %v1263_v48 = vlaneseq  ;;  %s2232_s11 = sshra.s32 %s1601_s9, 4  ;;  %s2233_s11 = int_to_ptr.hbm [resolvable:$true] %s2232_s11 }
 0x1dd   : > { %v1246_v30 = vrot.slane %v1245_v24, 1  ;;  %v1542_v41 = vrot.slane %v1541_v25, 2  ;;  %vm1259_vm2 = vcmask 1041408   ;;  %s2234_s12 = scalar_lea.hbm %s2233_s11, 8  ;;  %p2239_p2 = scmp.lt.s32.totalorder %s2233_s11, %s2962_s4 }
 0x1de   : > { %v1553_v42 = vsel %vm1255_vm0, %v1434_v22, %v1550_v26  ;;  %v1210_v52 = vadd.f32 %v1209_v32, %v1208_v27  ;;  %v1507_v40 = vrot.slane %v1506_v33, 1  ;;  %vm1265_vm3 = vcmp.lt.s32.totalorder %v1263_v48, 512  ;;  %p2235_p3 = scmp.ne.s32.totalorder %s2233_s11, %s2234_s12  ;;  %p2240_p1 = scmp.lt.s32.totalorder %s2238_s28, %s2234_s12 }
 0x1df   : > { %v1247_v44 = vadd.f32 %v1246_v30, %v1245_v24  ;;  %v1543_v31 = vadd.f32 %v1542_v41, %v1541_v25 }
 0x1e0   : > { %v1253_v54 = vrot.slane %v1210_v52, 6  ;;  %v1508_v0 = vadd.f32 %v1507_v40, %v1506_v33  ;;  %p2236_p5 = pnand %p2235_p3, %p2427_p7  ;;  %p2241_p4 = por %p2240_p1, %p2239_p2 }
 0x1e1   : > { %v1254_v34 = vrot.slane %v1247_v44, 5  ;;  %v1544_v51 = vrot.slane %v1543_v31, 1 }
 0x1e2   : > { %v1551_v55 = vrot.slane %v1508_v0, 6  ;;  %p2237_p9 = pneg %p2236_p5 }
 0x1e3   : > { %v1258_v38 = vsel %vm1257_vm1, %v1253_v54, %v1254_v34  ;;  %v1545_v56 = vadd.f32 %v1544_v51, %v1543_v31 }
 0x1e4   : > { %v1260_v39 = vsel %vm1259_vm2, %v1256_v28, %v1258_v38  ;;  %p2242_p8 = pnand %p2241_p4, %p2237_p9 }
 0x1e5   : > { %v1552_v5 = vrot.slane %v1545_v56, 5  ;;  %v1262_v6 = vadd.f32 %v1260_v39, %v1099_v35 }
 0x1e7   : > { %v1554_v9 = vsel %vm1257_vm1, %v1551_v55, %v1552_v5  ;;  %1267 = vst.msk [vmem:[%s2841_s25] ss:$2 sm:$0xf] %vm1265_vm3, %v1262_v6 }
 0x1e8   : > { %v1555_v46 = vsel %vm1259_vm2, %v1553_v42, %v1554_v9 }
 0x1e9   : > { %v1557_v10 = vadd.f32 %v1944_v45, %v1555_v46 }
 0x1eb   : > { %1945 = vst.msk [vmem:[%s2841_s25 + $0x1] ss:$2 sm:$0xf] %vm1265_vm3, %v1557_v10 }
 0x1ec   : > { %2245 = shalt.err (!%p2242_p8)
}
 0x1ed   : > { %2016 = dma.vmem_to_hbm [thread:$0]  (%p2427_p7), %s1599_s18, 128, %s1601_s9, %s1565_s10  }
 0x1ee PF: > { %s1612_s21 = sand.u32 1, %s2288_s15   ;;  %p2031_p10 = pnand %p1742_p11, %p2393_p6 }
 0x1ef   : > { %s1613_s25 = scalar_lea.sflag [#allocation4], %s1612_s21 }
 0x1f0   : > { %p2032_p12 = pneg %p2031_p10 }
 0x1f2   : > { %2279 = dma.done.wait (%p2032_p12), %s1613_s25, 8192  }
 0x1f3   : > { %2281 = vsyncadd (%p2032_p12), %s1613_s25, 4294959104  ;;  %s1623_s1 = scalar_lea.sflag [#allocation10], %s1612_s21 }
 0x1f4   : > { %2283 = dma.done.wait (%p2032_p12), %s1623_s1, 128  }
 0x1f5   : > { %2285 = vsyncadd (%p2032_p12), %s1623_s1, 4294967168  ;;  %s25_s20 = sadd.s32 1, %s2308_s20   ;;  %s2974_s15 = smov %s2292_s16 }
 0x1f6   : > { %p22_p13 = scmp.ge.s32.totalorder %s25_s20, 4   ;;  %s2975_s16 = smov %s2296_s17 }
 0x1f7   : > { %s2976_s17 = smov %s2436_s7  ;;  %s2977_s18 = smov %s2304_s19 }
 0x1f8   : > { %s2978_s19 = smov %s2980_s14  ;;  %24 = sbr.rel (!%p22_p13) target bundleno = 12 (0xc), region = 107 }
 0x1fd   :  { %1629 = vsyncpa [#allocation3], 1 }
 0x1fe   :  { %1631 = vsyncpa [#allocation3 + $0x1], 1 }
 0x1ff   :  { %1632 = vsyncpa [#allocation6], 1 }
 0x200   :  { %1633 = vsyncpa [#allocation4], 1 }
 0x201   :  { %1635 = vsyncpa [#allocation4 + $0x1], 1 }
 0x202   :  { %1636 = vsyncpa [#allocation10], 1 }
 0x203   :  { %1638 = vsyncpa [#allocation10 + $0x1], 1 }

</bundles_post_ra>
